<compile_context>
chip_gen: v7x
topology: tpu7x:2x2x1
jax: 0.10.0
libtpu: 0.0.40
codegen_flags: <defaults>
</compile_context>

<pallas_src>
import functools

import jax
import jax.numpy as jnp
from jax.experimental import pallas as pl
from jax.experimental.pallas import tpu as pltpu


def _bilstm_kernel(gxf_ref, gxb_ref, len_ref, whhf_ref, whhb_ref, out_ref):
    # gxf_ref/gxb_ref: (T, TB, 4H) precomputed x-projections (+bias), gate order [i, f, o, g]
    # len_ref:         (TB, 1) int32 sequence lengths for this batch tile
    # whhf_ref/whhb_ref: (H, 4H) recurrent weights (resident across grid steps)
    # out_ref:         (TB, 2H) concat(h_fwd_final, h_bwd_final)
    T, TB, _ = gxf_ref.shape
    H = whhf_ref.shape[0]

    whh_f = whhf_ref[...]
    whh_b = whhb_ref[...]
    # hoisted broadcast of lengths to (TB, H) so the per-step mask is a plain vector compare
    lens_b = jnp.broadcast_to(len_ref[...], (TB, H))

    def lstm_step(gx_t, valid, h, c, whh):
        # only the recurrent matmul remains on the serial path (K = H)
        gates = gx_t + jnp.dot(h, whh, preferred_element_type=jnp.float32)
        sig = jax.nn.sigmoid(gates[:, : 3 * H])      # contiguous [i, f, o] slab
        i = sig[:, 0 * H:1 * H]
        f = sig[:, 1 * H:2 * H]
        o = sig[:, 2 * H:3 * H]
        g = jnp.tanh(gates[:, 3 * H:])               # g gate last
        c_new = f * c + i * g
        h_new = o * jnp.tanh(c_new)
        # packed-sequence semantics: padded steps keep previous state
        h = jnp.where(valid, h_new, h)
        c = jnp.where(valid, c_new, c)
        return h, c

    def body(t, carry):
        h_f, c_f, h_b, c_b = carry
        # forward direction, time t
        h_f, c_f = lstm_step(gxf_ref[t], t < lens_b, h_f, c_f, whh_f)
        # backward direction, time T-1-t
        tb = T - 1 - t
        h_b, c_b = lstm_step(gxb_ref[tb], tb < lens_b, h_b, c_b, whh_b)
        return h_f, c_f, h_b, c_b

    zeros = jnp.zeros((TB, H), jnp.float32)
    h_f, _, h_b, _ = jax.lax.fori_loop(
        0, T, body, (zeros, zeros, zeros, zeros), unroll=True)

    out_ref[...] = jnp.concatenate([h_f, h_b], axis=1)


@functools.partial(jax.jit, static_argnames=("out_dim",))
def bilstm_forward(texts, lengths, params, *, out_dim):
    H = params["whh_f"].shape[0]
    B, T = texts.shape

    # gate-column permutation: torch order [i, f, g, o] -> kernel order [i, f, o, g]
    perm = jnp.concatenate([jnp.arange(0, 2 * H),
                            jnp.arange(3 * H, 4 * H),
                            jnp.arange(2 * H, 3 * H)])
    reorder = lambda w: w[..., perm]

    # --- glue (plain XLA): embedding gather + hoisted input projections -----
    emb = params["embedding"][texts].astype(jnp.float32)        # (B, T, E)
    emb_tm = jnp.transpose(emb, (1, 0, 2))                      # (T, B, E) time-major
    # one big matmul per direction (M = T*B), bias folded in here
    gx_f = jnp.einsum("tbe,eg->tbg", emb_tm, reorder(params["wih_f"])) \
        + reorder(params["b_f"])[None]
    gx_b = jnp.einsum("tbe,eg->tbg", emb_tm, reorder(params["wih_b"])) \
        + reorder(params["b_b"])[None]
    whh_f = reorder(params["whh_f"])
    whh_b = reorder(params["whh_b"])

    # pad batch to a sublane-aligned tile; padded rows get length 0 (state stays zero)
    TB = 8
    Bp = ((B + TB - 1) // TB) * TB
    pad_b = Bp - B
    gx_f = jnp.pad(gx_f, ((0, 0), (0, pad_b), (0, 0)))
    gx_b = jnp.pad(gx_b, ((0, 0), (0, pad_b), (0, 0)))
    lens = jnp.pad(lengths.astype(jnp.int32), (0, pad_b))[:, None]   # (Bp, 1)

    h_cat = pl.pallas_call(
        _bilstm_kernel,
        out_shape=jax.ShapeDtypeStruct((Bp, 2 * H), jnp.float32),
        grid_spec=pltpu.PrefetchScalarGridSpec(
            num_scalar_prefetch=0,
            grid=(Bp // TB,),
            in_specs=[
                pl.BlockSpec((T, TB, 4 * H), lambda b: (0, b, 0)),   # gx_f
                pl.BlockSpec((T, TB, 4 * H), lambda b: (0, b, 0)),   # gx_b
                pl.BlockSpec((TB, 1), lambda b: (b, 0)),             # lengths
                pl.BlockSpec((H, 4 * H), lambda b: (0, 0)),          # whh_f (resident)
                pl.BlockSpec((H, 4 * H), lambda b: (0, 0)),          # whh_b (resident)
            ],
            out_specs=pl.BlockSpec((TB, 2 * H), lambda b: (b, 0)),
        ),
        compiler_params=pltpu.CompilerParams(
            dimension_semantics=("parallel",)),
    )(gx_f, gx_b, lens, whh_f, whh_b)

    # final FC (out_dim is tiny) in plain XLA; keeps kernel output lane-dense at 2H
    return h_cat[:B] @ params["wfc"] + params["bfc"]


def _reference_forward(texts, lengths, params, out_dim):
    """Pure-JAX reference of the same math (packed BiLSTM final hiddens + fc)."""
    emb = params["embedding"][texts].astype(jnp.float32)   # (B, T, E)
    B, T, _ = emb.shape
    H = params["whh_f"].shape[0]
    mask = (jnp.arange(T)[None, :] < lengths[:, None]).astype(jnp.float32)  # (B, T)

    def step(x_t, m, h, c, wih, whh, b):
        gates = x_t @ wih + h @ whh + b
        i = jax.nn.sigmoid(gates[:, 0 * H:1 * H])
        f = jax.nn.sigmoid(gates[:, 1 * H:2 * H])
        g = jnp.tanh(gates[:, 2 * H:3 * H])
        o = jax.nn.sigmoid(gates[:, 3 * H:4 * H])
        c_new = f * c + i * g
        h_new = o * jnp.tanh(c_new)
        m = m[:, None]
        return m * h_new + (1 - m) * h, m * c_new + (1 - m) * c

    h_f = c_f = h_b = c_b = jnp.zeros((B, H), jnp.float32)
    for t in range(T):
        h_f, c_f = step(emb[:, t], mask[:, t], h_f, c_f,
                        params["wih_f"], params["whh_f"], params["b_f"])
        tb = T - 1 - t
        h_b, c_b = step(emb[:, tb], mask[:, tb], h_b, c_b,
                        params["wih_b"], params["whh_b"], params["b_b"])
    h_cat = jnp.concatenate([h_f, h_b], axis=1)
    return h_cat @ params["wfc"] + params["bfc"]


def init_params(key, vocab_size, emb_dim, hid_dim, out_dim, pad_idx):
    ks = jax.random.split(key, 10)
    s = 1.0 / jnp.sqrt(hid_dim)
    emb = jax.random.normal(ks[0], (vocab_size, emb_dim), jnp.float32) * 0.1
    emb = emb.at[pad_idx].set(0.0)  # padding_idx row is zero
    u = lambda k, shp: jax.random.uniform(k, shp, jnp.float32, -s, s)
    params = {
        "embedding": emb,
        # forward direction (PyTorch W_ih: (4H, E) stored transposed (E, 4H); b = b_ih + b_hh)
        "wih_f": u(ks[1], (emb_dim, 4 * hid_dim)),
        "whh_f": u(ks[2], (hid_dim, 4 * hid_dim)),
        "b_f":  u(ks[3], (1, 4 * hid_dim)),
        # backward direction
        "wih_b": u(ks[4], (emb_dim, 4 * hid_dim)),
        "whh_b": u(ks[5], (hid_dim, 4 * hid_dim)),
        "b_b":  u(ks[6], (1, 4 * hid_dim)),
        # fc: (out_dim, 2H) in torch -> stored transposed (2H, out_dim)
        "wfc": u(ks[7], (2 * hid_dim, out_dim)),
        "bfc": u(ks[8], (1, out_dim)),
    }
    return params


if __name__ == "__main__":
    vocab_size, emb_dim, hid_dim, out_dim, pad_idx = 50, 32, 32, 4, 0
    B, T = 2, 8

    key = jax.random.PRNGKey(0)
    k_tok, k_par = jax.random.split(key)

    lengths = jnp.array([8, 5], dtype=jnp.int32)
    texts = jax.random.randint(k_tok, (B, T), 1, vocab_size, dtype=jnp.int32)
    # apply padding past each sequence's length
    pad_mask = jnp.arange(T)[None, :] >= lengths[:, None]
    texts = jnp.where(pad_mask, pad_idx, texts)

    params = init_params(k_par, vocab_size, emb_dim, hid_dim, out_dim, pad_idx)

    out = bilstm_forward(texts, lengths, params, out_dim=out_dim)
    out = jax.block_until_ready(out)

    ref = _reference_forward(texts, lengths, params, out_dim)
    assert out.shape == (B, out_dim)
    assert jnp.allclose(out, ref, rtol=1e-4, atol=1e-4), "mismatch vs pure-JAX reference"

    print("KERNEL_OK")
</pallas_src>

<mosaic_0001>
module attributes {stable_mosaic.version = 11 : i64} {
  func.func @_bilstm_kernel(%arg0: i32, %arg1: memref<8x8x128xf32, #tpu.memory_space<vmem>>, %arg2: memref<8x8x128xf32, #tpu.memory_space<vmem>>, %arg3: memref<8x1xi32, #tpu.memory_space<vmem>>, %arg4: memref<32x128xf32, #tpu.memory_space<vmem>>, %arg5: memref<32x128xf32, #tpu.memory_space<vmem>>, %arg6: memref<8x64xf32, #tpu.memory_space<vmem>>) attributes {dimension_semantics = [#tpu.dimension_semantics<parallel>], iteration_bounds = array<i64: 1>, scalar_prefetch = 0 : i64, scratch_operands = 0 : i64, tpu.core_type = #tpu.core_type<tc>, window_params = [{transform_indices = @transform_0, window_bounds = array<i64: 8, 8, 128>}, {transform_indices = @transform_1, window_bounds = array<i64: 8, 8, 128>}, {transform_indices = @transform_2, window_bounds = array<i64: 8, 1>}, {pipeline_mode = #tpu.pipeline_mode<synchronous>, transform_indices = @transform_3, window_bounds = array<i64: 32, 128>}, {pipeline_mode = #tpu.pipeline_mode<synchronous>, transform_indices = @transform_4, window_bounds = array<i64: 32, 128>}, {transform_indices = @transform_5, window_bounds = array<i64: 8, 64>}]} {
    %c0 = arith.constant 0 : index
    %c0_0 = arith.constant 0 : index
    %0 = vector.load %arg4[%c0, %c0_0] : memref<32x128xf32, #tpu.memory_space<vmem>>, vector<32x128xf32>
    %c0_1 = arith.constant 0 : index
    %c0_2 = arith.constant 0 : index
    %1 = vector.load %arg5[%c0_1, %c0_2] : memref<32x128xf32, #tpu.memory_space<vmem>>, vector<32x128xf32>
    %c0_3 = arith.constant 0 : index
    %c0_4 = arith.constant 0 : index
    %2 = vector.load %arg3[%c0_3, %c0_4] : memref<8x1xi32, #tpu.memory_space<vmem>>, vector<8x1xi32>
    %3 = vector.shape_cast %2 : vector<8x1xi32> to vector<8x1xi32>
    %4 = vector.broadcast %3 : vector<8x1xi32> to vector<8x32xi32>
    %cst = arith.constant 0.000000e+00 : f32
    %5 = vector.broadcast %cst : f32 to vector<8x32xf32>
    %c0_i32 = arith.constant 0 : i32
    %6 = arith.index_cast %c0_i32 : i32 to index
    %c0_5 = arith.constant 0 : index
    %c0_6 = arith.constant 0 : index
    %7 = vector.load %arg1[%6, %c0_5, %c0_6] : memref<8x8x128xf32, #tpu.memory_space<vmem>>, vector<1x8x128xf32>
    %8 = vector.shape_cast %7 : vector<1x8x128xf32> to vector<8x128xf32>
    %9 = vector.broadcast %c0_i32 : i32 to vector<8x32xi32>
    %10 = arith.cmpi slt, %9, %4 : vector<8x32xi32>
    %cst_7 = arith.constant dense<0.000000e+00> : vector<8x128xf32>
    %11 = tpu.matmul %5, %0, %cst_7 {dimension_numbers = #tpu.dot_dimension_numbers<[1], [0], [0], [1], [0, 0, 1, 1], [], []>} : vector<8x32xf32>, vector<32x128xf32>, vector<8x128xf32> -> vector<8x128xf32>
    %12 = arith.addf %8, %11 : vector<8x128xf32>
    %13 = vector.extract_strided_slice %12 {offsets = [0, 0], sizes = [8, 96], strides = [1, 1]} : vector<8x128xf32> to vector<8x96xf32>
    %14 = arith.negf %13 : vector<8x96xf32>
    %15 = math.exp %14 : vector<8x96xf32>
    %cst_8 = arith.constant 1.000000e+00 : f32
    %16 = vector.broadcast %cst_8 : f32 to vector<8x96xf32>
    %17 = arith.addf %16, %15 : vector<8x96xf32>
    %18 = arith.divf %16, %17 : vector<8x96xf32>
    %19 = vector.extract_strided_slice %18 {offsets = [0, 0], sizes = [8, 32], strides = [1, 1]} : vector<8x96xf32> to vector<8x32xf32>
    %20 = vector.extract_strided_slice %18 {offsets = [0, 32], sizes = [8, 32], strides = [1, 1]} : vector<8x96xf32> to vector<8x32xf32>
    %21 = vector.extract_strided_slice %18 {offsets = [0, 64], sizes = [8, 32], strides = [1, 1]} : vector<8x96xf32> to vector<8x32xf32>
    %22 = vector.extract_strided_slice %12 {offsets = [0, 96], sizes = [8, 32], strides = [1, 1]} : vector<8x128xf32> to vector<8x32xf32>
    %23 = math.tanh %22 : vector<8x32xf32>
    %24 = arith.mulf %20, %5 : vector<8x32xf32>
    %25 = arith.mulf %19, %23 : vector<8x32xf32>
    %26 = arith.addf %24, %25 : vector<8x32xf32>
    %27 = math.tanh %26 : vector<8x32xf32>
    %28 = arith.mulf %21, %27 : vector<8x32xf32>
    %29 = arith.select %10, %28, %5 : vector<8x32xi1>, vector<8x32xf32>
    %30 = arith.select %10, %26, %5 : vector<8x32xi1>, vector<8x32xf32>
    %c7_i32 = arith.constant 7 : i32
    %31 = arith.subi %c7_i32, %c0_i32 : i32
    %32 = arith.index_cast %31 : i32 to index
    %c0_9 = arith.constant 0 : index
    %c0_10 = arith.constant 0 : index
    %33 = vector.load %arg2[%32, %c0_9, %c0_10] : memref<8x8x128xf32, #tpu.memory_space<vmem>>, vector<1x8x128xf32>
    %34 = vector.shape_cast %33 : vector<1x8x128xf32> to vector<8x128xf32>
    %35 = vector.broadcast %31 : i32 to vector<8x32xi32>
    %36 = arith.cmpi slt, %35, %4 : vector<8x32xi32>
    %cst_11 = arith.constant dense<0.000000e+00> : vector<8x128xf32>
    %37 = tpu.matmul %5, %1, %cst_11 {dimension_numbers = #tpu.dot_dimension_numbers<[1], [0], [0], [1], [0, 0, 1, 1], [], []>} : vector<8x32xf32>, vector<32x128xf32>, vector<8x128xf32> -> vector<8x128xf32>
    %38 = arith.addf %34, %37 : vector<8x128xf32>
    %39 = vector.extract_strided_slice %38 {offsets = [0, 0], sizes = [8, 96], strides = [1, 1]} : vector<8x128xf32> to vector<8x96xf32>
    %40 = arith.negf %39 : vector<8x96xf32>
    %41 = math.exp %40 : vector<8x96xf32>
    %cst_12 = arith.constant 1.000000e+00 : f32
    %42 = vector.broadcast %cst_12 : f32 to vector<8x96xf32>
    %43 = arith.addf %42, %41 : vector<8x96xf32>
    %44 = arith.divf %42, %43 : vector<8x96xf32>
    %45 = vector.extract_strided_slice %44 {offsets = [0, 0], sizes = [8, 32], strides = [1, 1]} : vector<8x96xf32> to vector<8x32xf32>
    %46 = vector.extract_strided_slice %44 {offsets = [0, 32], sizes = [8, 32], strides = [1, 1]} : vector<8x96xf32> to vector<8x32xf32>
    %47 = vector.extract_strided_slice %44 {offsets = [0, 64], sizes = [8, 32], strides = [1, 1]} : vector<8x96xf32> to vector<8x32xf32>
    %48 = vector.extract_strided_slice %38 {offsets = [0, 96], sizes = [8, 32], strides = [1, 1]} : vector<8x128xf32> to vector<8x32xf32>
    %49 = math.tanh %48 : vector<8x32xf32>
    %50 = arith.mulf %46, %5 : vector<8x32xf32>
    %51 = arith.mulf %45, %49 : vector<8x32xf32>
    %52 = arith.addf %50, %51 : vector<8x32xf32>
    %53 = math.tanh %52 : vector<8x32xf32>
    %54 = arith.mulf %47, %53 : vector<8x32xf32>
    %55 = arith.select %36, %54, %5 : vector<8x32xi1>, vector<8x32xf32>
    %56 = arith.select %36, %52, %5 : vector<8x32xi1>, vector<8x32xf32>
    %c1_i32 = arith.constant 1 : i32
    %57 = arith.index_cast %c1_i32 : i32 to index
    %c0_13 = arith.constant 0 : index
    %c0_14 = arith.constant 0 : index
    %58 = vector.load %arg1[%57, %c0_13, %c0_14] : memref<8x8x128xf32, #tpu.memory_space<vmem>>, vector<1x8x128xf32>
    %59 = vector.shape_cast %58 : vector<1x8x128xf32> to vector<8x128xf32>
    %60 = vector.broadcast %c1_i32 : i32 to vector<8x32xi32>
    %61 = arith.cmpi slt, %60, %4 : vector<8x32xi32>
    %cst_15 = arith.constant dense<0.000000e+00> : vector<8x128xf32>
    %62 = tpu.matmul %29, %0, %cst_15 {dimension_numbers = #tpu.dot_dimension_numbers<[1], [0], [0], [1], [0, 0, 1, 1], [], []>} : vector<8x32xf32>, vector<32x128xf32>, vector<8x128xf32> -> vector<8x128xf32>
    %63 = arith.addf %59, %62 : vector<8x128xf32>
    %64 = vector.extract_strided_slice %63 {offsets = [0, 0], sizes = [8, 96], strides = [1, 1]} : vector<8x128xf32> to vector<8x96xf32>
    %65 = arith.negf %64 : vector<8x96xf32>
    %66 = math.exp %65 : vector<8x96xf32>
    %cst_16 = arith.constant 1.000000e+00 : f32
    %67 = vector.broadcast %cst_16 : f32 to vector<8x96xf32>
    %68 = arith.addf %67, %66 : vector<8x96xf32>
    %69 = arith.divf %67, %68 : vector<8x96xf32>
    %70 = vector.extract_strided_slice %69 {offsets = [0, 0], sizes = [8, 32], strides = [1, 1]} : vector<8x96xf32> to vector<8x32xf32>
    %71 = vector.extract_strided_slice %69 {offsets = [0, 32], sizes = [8, 32], strides = [1, 1]} : vector<8x96xf32> to vector<8x32xf32>
    %72 = vector.extract_strided_slice %69 {offsets = [0, 64], sizes = [8, 32], strides = [1, 1]} : vector<8x96xf32> to vector<8x32xf32>
    %73 = vector.extract_strided_slice %63 {offsets = [0, 96], sizes = [8, 32], strides = [1, 1]} : vector<8x128xf32> to vector<8x32xf32>
    %74 = math.tanh %73 : vector<8x32xf32>
    %75 = arith.mulf %71, %30 : vector<8x32xf32>
    %76 = arith.mulf %70, %74 : vector<8x32xf32>
    %77 = arith.addf %75, %76 : vector<8x32xf32>
    %78 = math.tanh %77 : vector<8x32xf32>
    %79 = arith.mulf %72, %78 : vector<8x32xf32>
    %80 = arith.select %61, %79, %29 : vector<8x32xi1>, vector<8x32xf32>
    %81 = arith.select %61, %77, %30 : vector<8x32xi1>, vector<8x32xf32>
    %c7_i32_17 = arith.constant 7 : i32
    %82 = arith.subi %c7_i32_17, %c1_i32 : i32
    %83 = arith.index_cast %82 : i32 to index
    %c0_18 = arith.constant 0 : index
    %c0_19 = arith.constant 0 : index
    %84 = vector.load %arg2[%83, %c0_18, %c0_19] : memref<8x8x128xf32, #tpu.memory_space<vmem>>, vector<1x8x128xf32>
    %85 = vector.shape_cast %84 : vector<1x8x128xf32> to vector<8x128xf32>
    %86 = vector.broadcast %82 : i32 to vector<8x32xi32>
    %87 = arith.cmpi slt, %86, %4 : vector<8x32xi32>
    %cst_20 = arith.constant dense<0.000000e+00> : vector<8x128xf32>
    %88 = tpu.matmul %55, %1, %cst_20 {dimension_numbers = #tpu.dot_dimension_numbers<[1], [0], [0], [1], [0, 0, 1, 1], [], []>} : vector<8x32xf32>, vector<32x128xf32>, vector<8x128xf32> -> vector<8x128xf32>
    %89 = arith.addf %85, %88 : vector<8x128xf32>
    %90 = vector.extract_strided_slice %89 {offsets = [0, 0], sizes = [8, 96], strides = [1, 1]} : vector<8x128xf32> to vector<8x96xf32>
    %91 = arith.negf %90 : vector<8x96xf32>
    %92 = math.exp %91 : vector<8x96xf32>
    %cst_21 = arith.constant 1.000000e+00 : f32
    %93 = vector.broadcast %cst_21 : f32 to vector<8x96xf32>
    %94 = arith.addf %93, %92 : vector<8x96xf32>
    %95 = arith.divf %93, %94 : vector<8x96xf32>
    %96 = vector.extract_strided_slice %95 {offsets = [0, 0], sizes = [8, 32], strides = [1, 1]} : vector<8x96xf32> to vector<8x32xf32>
    %97 = vector.extract_strided_slice %95 {offsets = [0, 32], sizes = [8, 32], strides = [1, 1]} : vector<8x96xf32> to vector<8x32xf32>
    %98 = vector.extract_strided_slice %95 {offsets = [0, 64], sizes = [8, 32], strides = [1, 1]} : vector<8x96xf32> to vector<8x32xf32>
    %99 = vector.extract_strided_slice %89 {offsets = [0, 96], sizes = [8, 32], strides = [1, 1]} : vector<8x128xf32> to vector<8x32xf32>
    %100 = math.tanh %99 : vector<8x32xf32>
    %101 = arith.mulf %97, %56 : vector<8x32xf32>
    %102 = arith.mulf %96, %100 : vector<8x32xf32>
    %103 = arith.addf %101, %102 : vector<8x32xf32>
    %104 = math.tanh %103 : vector<8x32xf32>
    %105 = arith.mulf %98, %104 : vector<8x32xf32>
    %106 = arith.select %87, %105, %55 : vector<8x32xi1>, vector<8x32xf32>
    %107 = arith.select %87, %103, %56 : vector<8x32xi1>, vector<8x32xf32>
    %c2_i32 = arith.constant 2 : i32
    %108 = arith.index_cast %c2_i32 : i32 to index
    %c0_22 = arith.constant 0 : index
    %c0_23 = arith.constant 0 : index
    %109 = vector.load %arg1[%108, %c0_22, %c0_23] : memref<8x8x128xf32, #tpu.memory_space<vmem>>, vector<1x8x128xf32>
    %110 = vector.shape_cast %109 : vector<1x8x128xf32> to vector<8x128xf32>
    %111 = vector.broadcast %c2_i32 : i32 to vector<8x32xi32>
    %112 = arith.cmpi slt, %111, %4 : vector<8x32xi32>
    %cst_24 = arith.constant dense<0.000000e+00> : vector<8x128xf32>
    %113 = tpu.matmul %80, %0, %cst_24 {dimension_numbers = #tpu.dot_dimension_numbers<[1], [0], [0], [1], [0, 0, 1, 1], [], []>} : vector<8x32xf32>, vector<32x128xf32>, vector<8x128xf32> -> vector<8x128xf32>
    %114 = arith.addf %110, %113 : vector<8x128xf32>
    %115 = vector.extract_strided_slice %114 {offsets = [0, 0], sizes = [8, 96], strides = [1, 1]} : vector<8x128xf32> to vector<8x96xf32>
    %116 = arith.negf %115 : vector<8x96xf32>
    %117 = math.exp %116 : vector<8x96xf32>
    %cst_25 = arith.constant 1.000000e+00 : f32
    %118 = vector.broadcast %cst_25 : f32 to vector<8x96xf32>
    %119 = arith.addf %118, %117 : vector<8x96xf32>
    %120 = arith.divf %118, %119 : vector<8x96xf32>
    %121 = vector.extract_strided_slice %120 {offsets = [0, 0], sizes = [8, 32], strides = [1, 1]} : vector<8x96xf32> to vector<8x32xf32>
    %122 = vector.extract_strided_slice %120 {offsets = [0, 32], sizes = [8, 32], strides = [1, 1]} : vector<8x96xf32> to vector<8x32xf32>
    %123 = vector.extract_strided_slice %120 {offsets = [0, 64], sizes = [8, 32], strides = [1, 1]} : vector<8x96xf32> to vector<8x32xf32>
    %124 = vector.extract_strided_slice %114 {offsets = [0, 96], sizes = [8, 32], strides = [1, 1]} : vector<8x128xf32> to vector<8x32xf32>
    %125 = math.tanh %124 : vector<8x32xf32>
    %126 = arith.mulf %122, %81 : vector<8x32xf32>
    %127 = arith.mulf %121, %125 : vector<8x32xf32>
    %128 = arith.addf %126, %127 : vector<8x32xf32>
    %129 = math.tanh %128 : vector<8x32xf32>
    %130 = arith.mulf %123, %129 : vector<8x32xf32>
    %131 = arith.select %112, %130, %80 : vector<8x32xi1>, vector<8x32xf32>
    %132 = arith.select %112, %128, %81 : vector<8x32xi1>, vector<8x32xf32>
    %c7_i32_26 = arith.constant 7 : i32
    %133 = arith.subi %c7_i32_26, %c2_i32 : i32
    %134 = arith.index_cast %133 : i32 to index
    %c0_27 = arith.constant 0 : index
    %c0_28 = arith.constant 0 : index
    %135 = vector.load %arg2[%134, %c0_27, %c0_28] : memref<8x8x128xf32, #tpu.memory_space<vmem>>, vector<1x8x128xf32>
    %136 = vector.shape_cast %135 : vector<1x8x128xf32> to vector<8x128xf32>
    %137 = vector.broadcast %133 : i32 to vector<8x32xi32>
    %138 = arith.cmpi slt, %137, %4 : vector<8x32xi32>
    %cst_29 = arith.constant dense<0.000000e+00> : vector<8x128xf32>
    %139 = tpu.matmul %106, %1, %cst_29 {dimension_numbers = #tpu.dot_dimension_numbers<[1], [0], [0], [1], [0, 0, 1, 1], [], []>} : vector<8x32xf32>, vector<32x128xf32>, vector<8x128xf32> -> vector<8x128xf32>
    %140 = arith.addf %136, %139 : vector<8x128xf32>
    %141 = vector.extract_strided_slice %140 {offsets = [0, 0], sizes = [8, 96], strides = [1, 1]} : vector<8x128xf32> to vector<8x96xf32>
    %142 = arith.negf %141 : vector<8x96xf32>
    %143 = math.exp %142 : vector<8x96xf32>
    %cst_30 = arith.constant 1.000000e+00 : f32
    %144 = vector.broadcast %cst_30 : f32 to vector<8x96xf32>
    %145 = arith.addf %144, %143 : vector<8x96xf32>
    %146 = arith.divf %144, %145 : vector<8x96xf32>
    %147 = vector.extract_strided_slice %146 {offsets = [0, 0], sizes = [8, 32], strides = [1, 1]} : vector<8x96xf32> to vector<8x32xf32>
    %148 = vector.extract_strided_slice %146 {offsets = [0, 32], sizes = [8, 32], strides = [1, 1]} : vector<8x96xf32> to vector<8x32xf32>
    %149 = vector.extract_strided_slice %146 {offsets = [0, 64], sizes = [8, 32], strides = [1, 1]} : vector<8x96xf32> to vector<8x32xf32>
    %150 = vector.extract_strided_slice %140 {offsets = [0, 96], sizes = [8, 32], strides = [1, 1]} : vector<8x128xf32> to vector<8x32xf32>
    %151 = math.tanh %150 : vector<8x32xf32>
    %152 = arith.mulf %148, %107 : vector<8x32xf32>
    %153 = arith.mulf %147, %151 : vector<8x32xf32>
    %154 = arith.addf %152, %153 : vector<8x32xf32>
    %155 = math.tanh %154 : vector<8x32xf32>
    %156 = arith.mulf %149, %155 : vector<8x32xf32>
    %157 = arith.select %138, %156, %106 : vector<8x32xi1>, vector<8x32xf32>
    %158 = arith.select %138, %154, %107 : vector<8x32xi1>, vector<8x32xf32>
    %c3_i32 = arith.constant 3 : i32
    %159 = arith.index_cast %c3_i32 : i32 to index
    %c0_31 = arith.constant 0 : index
    %c0_32 = arith.constant 0 : index
    %160 = vector.load %arg1[%159, %c0_31, %c0_32] : memref<8x8x128xf32, #tpu.memory_space<vmem>>, vector<1x8x128xf32>
    %161 = vector.shape_cast %160 : vector<1x8x128xf32> to vector<8x128xf32>
    %162 = vector.broadcast %c3_i32 : i32 to vector<8x32xi32>
    %163 = arith.cmpi slt, %162, %4 : vector<8x32xi32>
    %cst_33 = arith.constant dense<0.000000e+00> : vector<8x128xf32>
    %164 = tpu.matmul %131, %0, %cst_33 {dimension_numbers = #tpu.dot_dimension_numbers<[1], [0], [0], [1], [0, 0, 1, 1], [], []>} : vector<8x32xf32>, vector<32x128xf32>, vector<8x128xf32> -> vector<8x128xf32>
    %165 = arith.addf %161, %164 : vector<8x128xf32>
    %166 = vector.extract_strided_slice %165 {offsets = [0, 0], sizes = [8, 96], strides = [1, 1]} : vector<8x128xf32> to vector<8x96xf32>
    %167 = arith.negf %166 : vector<8x96xf32>
    %168 = math.exp %167 : vector<8x96xf32>
    %cst_34 = arith.constant 1.000000e+00 : f32
    %169 = vector.broadcast %cst_34 : f32 to vector<8x96xf32>
    %170 = arith.addf %169, %168 : vector<8x96xf32>
    %171 = arith.divf %169, %170 : vector<8x96xf32>
    %172 = vector.extract_strided_slice %171 {offsets = [0, 0], sizes = [8, 32], strides = [1, 1]} : vector<8x96xf32> to vector<8x32xf32>
    %173 = vector.extract_strided_slice %171 {offsets = [0, 32], sizes = [8, 32], strides = [1, 1]} : vector<8x96xf32> to vector<8x32xf32>
    %174 = vector.extract_strided_slice %171 {offsets = [0, 64], sizes = [8, 32], strides = [1, 1]} : vector<8x96xf32> to vector<8x32xf32>
    %175 = vector.extract_strided_slice %165 {offsets = [0, 96], sizes = [8, 32], strides = [1, 1]} : vector<8x128xf32> to vector<8x32xf32>
    %176 = math.tanh %175 : vector<8x32xf32>
    %177 = arith.mulf %173, %132 : vector<8x32xf32>
    %178 = arith.mulf %172, %176 : vector<8x32xf32>
    %179 = arith.addf %177, %178 : vector<8x32xf32>
    %180 = math.tanh %179 : vector<8x32xf32>
    %181 = arith.mulf %174, %180 : vector<8x32xf32>
    %182 = arith.select %163, %181, %131 : vector<8x32xi1>, vector<8x32xf32>
    %183 = arith.select %163, %179, %132 : vector<8x32xi1>, vector<8x32xf32>
    %c7_i32_35 = arith.constant 7 : i32
    %184 = arith.subi %c7_i32_35, %c3_i32 : i32
    %185 = arith.index_cast %184 : i32 to index
    %c0_36 = arith.constant 0 : index
    %c0_37 = arith.constant 0 : index
    %186 = vector.load %arg2[%185, %c0_36, %c0_37] : memref<8x8x128xf32, #tpu.memory_space<vmem>>, vector<1x8x128xf32>
    %187 = vector.shape_cast %186 : vector<1x8x128xf32> to vector<8x128xf32>
    %188 = vector.broadcast %184 : i32 to vector<8x32xi32>
    %189 = arith.cmpi slt, %188, %4 : vector<8x32xi32>
    %cst_38 = arith.constant dense<0.000000e+00> : vector<8x128xf32>
    %190 = tpu.matmul %157, %1, %cst_38 {dimension_numbers = #tpu.dot_dimension_numbers<[1], [0], [0], [1], [0, 0, 1, 1], [], []>} : vector<8x32xf32>, vector<32x128xf32>, vector<8x128xf32> -> vector<8x128xf32>
    %191 = arith.addf %187, %190 : vector<8x128xf32>
    %192 = vector.extract_strided_slice %191 {offsets = [0, 0], sizes = [8, 96], strides = [1, 1]} : vector<8x128xf32> to vector<8x96xf32>
    %193 = arith.negf %192 : vector<8x96xf32>
    %194 = math.exp %193 : vector<8x96xf32>
    %cst_39 = arith.constant 1.000000e+00 : f32
    %195 = vector.broadcast %cst_39 : f32 to vector<8x96xf32>
    %196 = arith.addf %195, %194 : vector<8x96xf32>
    %197 = arith.divf %195, %196 : vector<8x96xf32>
    %198 = vector.extract_strided_slice %197 {offsets = [0, 0], sizes = [8, 32], strides = [1, 1]} : vector<8x96xf32> to vector<8x32xf32>
    %199 = vector.extract_strided_slice %197 {offsets = [0, 32], sizes = [8, 32], strides = [1, 1]} : vector<8x96xf32> to vector<8x32xf32>
    %200 = vector.extract_strided_slice %197 {offsets = [0, 64], sizes = [8, 32], strides = [1, 1]} : vector<8x96xf32> to vector<8x32xf32>
    %201 = vector.extract_strided_slice %191 {offsets = [0, 96], sizes = [8, 32], strides = [1, 1]} : vector<8x128xf32> to vector<8x32xf32>
    %202 = math.tanh %201 : vector<8x32xf32>
    %203 = arith.mulf %199, %158 : vector<8x32xf32>
    %204 = arith.mulf %198, %202 : vector<8x32xf32>
    %205 = arith.addf %203, %204 : vector<8x32xf32>
    %206 = math.tanh %205 : vector<8x32xf32>
    %207 = arith.mulf %200, %206 : vector<8x32xf32>
    %208 = arith.select %189, %207, %157 : vector<8x32xi1>, vector<8x32xf32>
    %209 = arith.select %189, %205, %158 : vector<8x32xi1>, vector<8x32xf32>
    %c4_i32 = arith.constant 4 : i32
    %210 = arith.index_cast %c4_i32 : i32 to index
    %c0_40 = arith.constant 0 : index
    %c0_41 = arith.constant 0 : index
    %211 = vector.load %arg1[%210, %c0_40, %c0_41] : memref<8x8x128xf32, #tpu.memory_space<vmem>>, vector<1x8x128xf32>
    %212 = vector.shape_cast %211 : vector<1x8x128xf32> to vector<8x128xf32>
    %213 = vector.broadcast %c4_i32 : i32 to vector<8x32xi32>
    %214 = arith.cmpi slt, %213, %4 : vector<8x32xi32>
    %cst_42 = arith.constant dense<0.000000e+00> : vector<8x128xf32>
    %215 = tpu.matmul %182, %0, %cst_42 {dimension_numbers = #tpu.dot_dimension_numbers<[1], [0], [0], [1], [0, 0, 1, 1], [], []>} : vector<8x32xf32>, vector<32x128xf32>, vector<8x128xf32> -> vector<8x128xf32>
    %216 = arith.addf %212, %215 : vector<8x128xf32>
    %217 = vector.extract_strided_slice %216 {offsets = [0, 0], sizes = [8, 96], strides = [1, 1]} : vector<8x128xf32> to vector<8x96xf32>
    %218 = arith.negf %217 : vector<8x96xf32>
    %219 = math.exp %218 : vector<8x96xf32>
    %cst_43 = arith.constant 1.000000e+00 : f32
    %220 = vector.broadcast %cst_43 : f32 to vector<8x96xf32>
    %221 = arith.addf %220, %219 : vector<8x96xf32>
    %222 = arith.divf %220, %221 : vector<8x96xf32>
    %223 = vector.extract_strided_slice %222 {offsets = [0, 0], sizes = [8, 32], strides = [1, 1]} : vector<8x96xf32> to vector<8x32xf32>
    %224 = vector.extract_strided_slice %222 {offsets = [0, 32], sizes = [8, 32], strides = [1, 1]} : vector<8x96xf32> to vector<8x32xf32>
    %225 = vector.extract_strided_slice %222 {offsets = [0, 64], sizes = [8, 32], strides = [1, 1]} : vector<8x96xf32> to vector<8x32xf32>
    %226 = vector.extract_strided_slice %216 {offsets = [0, 96], sizes = [8, 32], strides = [1, 1]} : vector<8x128xf32> to vector<8x32xf32>
    %227 = math.tanh %226 : vector<8x32xf32>
    %228 = arith.mulf %224, %183 : vector<8x32xf32>
    %229 = arith.mulf %223, %227 : vector<8x32xf32>
    %230 = arith.addf %228, %229 : vector<8x32xf32>
    %231 = math.tanh %230 : vector<8x32xf32>
    %232 = arith.mulf %225, %231 : vector<8x32xf32>
    %233 = arith.select %214, %232, %182 : vector<8x32xi1>, vector<8x32xf32>
    %234 = arith.select %214, %230, %183 : vector<8x32xi1>, vector<8x32xf32>
    %c7_i32_44 = arith.constant 7 : i32
    %235 = arith.subi %c7_i32_44, %c4_i32 : i32
    %236 = arith.index_cast %235 : i32 to index
    %c0_45 = arith.constant 0 : index
    %c0_46 = arith.constant 0 : index
    %237 = vector.load %arg2[%236, %c0_45, %c0_46] : memref<8x8x128xf32, #tpu.memory_space<vmem>>, vector<1x8x128xf32>
    %238 = vector.shape_cast %237 : vector<1x8x128xf32> to vector<8x128xf32>
    %239 = vector.broadcast %235 : i32 to vector<8x32xi32>
    %240 = arith.cmpi slt, %239, %4 : vector<8x32xi32>
    %cst_47 = arith.constant dense<0.000000e+00> : vector<8x128xf32>
    %241 = tpu.matmul %208, %1, %cst_47 {dimension_numbers = #tpu.dot_dimension_numbers<[1], [0], [0], [1], [0, 0, 1, 1], [], []>} : vector<8x32xf32>, vector<32x128xf32>, vector<8x128xf32> -> vector<8x128xf32>
    %242 = arith.addf %238, %241 : vector<8x128xf32>
    %243 = vector.extract_strided_slice %242 {offsets = [0, 0], sizes = [8, 96], strides = [1, 1]} : vector<8x128xf32> to vector<8x96xf32>
    %244 = arith.negf %243 : vector<8x96xf32>
    %245 = math.exp %244 : vector<8x96xf32>
    %cst_48 = arith.constant 1.000000e+00 : f32
    %246 = vector.broadcast %cst_48 : f32 to vector<8x96xf32>
    %247 = arith.addf %246, %245 : vector<8x96xf32>
    %248 = arith.divf %246, %247 : vector<8x96xf32>
    %249 = vector.extract_strided_slice %248 {offsets = [0, 0], sizes = [8, 32], strides = [1, 1]} : vector<8x96xf32> to vector<8x32xf32>
    %250 = vector.extract_strided_slice %248 {offsets = [0, 32], sizes = [8, 32], strides = [1, 1]} : vector<8x96xf32> to vector<8x32xf32>
    %251 = vector.extract_strided_slice %248 {offsets = [0, 64], sizes = [8, 32], strides = [1, 1]} : vector<8x96xf32> to vector<8x32xf32>
    %252 = vector.extract_strided_slice %242 {offsets = [0, 96], sizes = [8, 32], strides = [1, 1]} : vector<8x128xf32> to vector<8x32xf32>
    %253 = math.tanh %252 : vector<8x32xf32>
    %254 = arith.mulf %250, %209 : vector<8x32xf32>
    %255 = arith.mulf %249, %253 : vector<8x32xf32>
    %256 = arith.addf %254, %255 : vector<8x32xf32>
    %257 = math.tanh %256 : vector<8x32xf32>
    %258 = arith.mulf %251, %257 : vector<8x32xf32>
    %259 = arith.select %240, %258, %208 : vector<8x32xi1>, vector<8x32xf32>
    %260 = arith.select %240, %256, %209 : vector<8x32xi1>, vector<8x32xf32>
    %c5_i32 = arith.constant 5 : i32
    %261 = arith.index_cast %c5_i32 : i32 to index
    %c0_49 = arith.constant 0 : index
    %c0_50 = arith.constant 0 : index
    %262 = vector.load %arg1[%261, %c0_49, %c0_50] : memref<8x8x128xf32, #tpu.memory_space<vmem>>, vector<1x8x128xf32>
    %263 = vector.shape_cast %262 : vector<1x8x128xf32> to vector<8x128xf32>
    %264 = vector.broadcast %c5_i32 : i32 to vector<8x32xi32>
    %265 = arith.cmpi slt, %264, %4 : vector<8x32xi32>
    %cst_51 = arith.constant dense<0.000000e+00> : vector<8x128xf32>
    %266 = tpu.matmul %233, %0, %cst_51 {dimension_numbers = #tpu.dot_dimension_numbers<[1], [0], [0], [1], [0, 0, 1, 1], [], []>} : vector<8x32xf32>, vector<32x128xf32>, vector<8x128xf32> -> vector<8x128xf32>
    %267 = arith.addf %263, %266 : vector<8x128xf32>
    %268 = vector.extract_strided_slice %267 {offsets = [0, 0], sizes = [8, 96], strides = [1, 1]} : vector<8x128xf32> to vector<8x96xf32>
    %269 = arith.negf %268 : vector<8x96xf32>
    %270 = math.exp %269 : vector<8x96xf32>
    %cst_52 = arith.constant 1.000000e+00 : f32
    %271 = vector.broadcast %cst_52 : f32 to vector<8x96xf32>
    %272 = arith.addf %271, %270 : vector<8x96xf32>
    %273 = arith.divf %271, %272 : vector<8x96xf32>
    %274 = vector.extract_strided_slice %273 {offsets = [0, 0], sizes = [8, 32], strides = [1, 1]} : vector<8x96xf32> to vector<8x32xf32>
    %275 = vector.extract_strided_slice %273 {offsets = [0, 32], sizes = [8, 32], strides = [1, 1]} : vector<8x96xf32> to vector<8x32xf32>
    %276 = vector.extract_strided_slice %273 {offsets = [0, 64], sizes = [8, 32], strides = [1, 1]} : vector<8x96xf32> to vector<8x32xf32>
    %277 = vector.extract_strided_slice %267 {offsets = [0, 96], sizes = [8, 32], strides = [1, 1]} : vector<8x128xf32> to vector<8x32xf32>
    %278 = math.tanh %277 : vector<8x32xf32>
    %279 = arith.mulf %275, %234 : vector<8x32xf32>
    %280 = arith.mulf %274, %278 : vector<8x32xf32>
    %281 = arith.addf %279, %280 : vector<8x32xf32>
    %282 = math.tanh %281 : vector<8x32xf32>
    %283 = arith.mulf %276, %282 : vector<8x32xf32>
    %284 = arith.select %265, %283, %233 : vector<8x32xi1>, vector<8x32xf32>
    %285 = arith.select %265, %281, %234 : vector<8x32xi1>, vector<8x32xf32>
    %c7_i32_53 = arith.constant 7 : i32
    %286 = arith.subi %c7_i32_53, %c5_i32 : i32
    %287 = arith.index_cast %286 : i32 to index
    %c0_54 = arith.constant 0 : index
    %c0_55 = arith.constant 0 : index
    %288 = vector.load %arg2[%287, %c0_54, %c0_55] : memref<8x8x128xf32, #tpu.memory_space<vmem>>, vector<1x8x128xf32>
    %289 = vector.shape_cast %288 : vector<1x8x128xf32> to vector<8x128xf32>
    %290 = vector.broadcast %286 : i32 to vector<8x32xi32>
    %291 = arith.cmpi slt, %290, %4 : vector<8x32xi32>
    %cst_56 = arith.constant dense<0.000000e+00> : vector<8x128xf32>
    %292 = tpu.matmul %259, %1, %cst_56 {dimension_numbers = #tpu.dot_dimension_numbers<[1], [0], [0], [1], [0, 0, 1, 1], [], []>} : vector<8x32xf32>, vector<32x128xf32>, vector<8x128xf32> -> vector<8x128xf32>
    %293 = arith.addf %289, %292 : vector<8x128xf32>
    %294 = vector.extract_strided_slice %293 {offsets = [0, 0], sizes = [8, 96], strides = [1, 1]} : vector<8x128xf32> to vector<8x96xf32>
    %295 = arith.negf %294 : vector<8x96xf32>
    %296 = math.exp %295 : vector<8x96xf32>
    %cst_57 = arith.constant 1.000000e+00 : f32
    %297 = vector.broadcast %cst_57 : f32 to vector<8x96xf32>
    %298 = arith.addf %297, %296 : vector<8x96xf32>
    %299 = arith.divf %297, %298 : vector<8x96xf32>
    %300 = vector.extract_strided_slice %299 {offsets = [0, 0], sizes = [8, 32], strides = [1, 1]} : vector<8x96xf32> to vector<8x32xf32>
    %301 = vector.extract_strided_slice %299 {offsets = [0, 32], sizes = [8, 32], strides = [1, 1]} : vector<8x96xf32> to vector<8x32xf32>
    %302 = vector.extract_strided_slice %299 {offsets = [0, 64], sizes = [8, 32], strides = [1, 1]} : vector<8x96xf32> to vector<8x32xf32>
    %303 = vector.extract_strided_slice %293 {offsets = [0, 96], sizes = [8, 32], strides = [1, 1]} : vector<8x128xf32> to vector<8x32xf32>
    %304 = math.tanh %303 : vector<8x32xf32>
    %305 = arith.mulf %301, %260 : vector<8x32xf32>
    %306 = arith.mulf %300, %304 : vector<8x32xf32>
    %307 = arith.addf %305, %306 : vector<8x32xf32>
    %308 = math.tanh %307 : vector<8x32xf32>
    %309 = arith.mulf %302, %308 : vector<8x32xf32>
    %310 = arith.select %291, %309, %259 : vector<8x32xi1>, vector<8x32xf32>
    %311 = arith.select %291, %307, %260 : vector<8x32xi1>, vector<8x32xf32>
    %c6_i32 = arith.constant 6 : i32
    %312 = arith.index_cast %c6_i32 : i32 to index
    %c0_58 = arith.constant 0 : index
    %c0_59 = arith.constant 0 : index
    %313 = vector.load %arg1[%312, %c0_58, %c0_59] : memref<8x8x128xf32, #tpu.memory_space<vmem>>, vector<1x8x128xf32>
    %314 = vector.shape_cast %313 : vector<1x8x128xf32> to vector<8x128xf32>
    %315 = vector.broadcast %c6_i32 : i32 to vector<8x32xi32>
    %316 = arith.cmpi slt, %315, %4 : vector<8x32xi32>
    %cst_60 = arith.constant dense<0.000000e+00> : vector<8x128xf32>
    %317 = tpu.matmul %284, %0, %cst_60 {dimension_numbers = #tpu.dot_dimension_numbers<[1], [0], [0], [1], [0, 0, 1, 1], [], []>} : vector<8x32xf32>, vector<32x128xf32>, vector<8x128xf32> -> vector<8x128xf32>
    %318 = arith.addf %314, %317 : vector<8x128xf32>
    %319 = vector.extract_strided_slice %318 {offsets = [0, 0], sizes = [8, 96], strides = [1, 1]} : vector<8x128xf32> to vector<8x96xf32>
    %320 = arith.negf %319 : vector<8x96xf32>
    %321 = math.exp %320 : vector<8x96xf32>
    %cst_61 = arith.constant 1.000000e+00 : f32
    %322 = vector.broadcast %cst_61 : f32 to vector<8x96xf32>
    %323 = arith.addf %322, %321 : vector<8x96xf32>
    %324 = arith.divf %322, %323 : vector<8x96xf32>
    %325 = vector.extract_strided_slice %324 {offsets = [0, 0], sizes = [8, 32], strides = [1, 1]} : vector<8x96xf32> to vector<8x32xf32>
    %326 = vector.extract_strided_slice %324 {offsets = [0, 32], sizes = [8, 32], strides = [1, 1]} : vector<8x96xf32> to vector<8x32xf32>
    %327 = vector.extract_strided_slice %324 {offsets = [0, 64], sizes = [8, 32], strides = [1, 1]} : vector<8x96xf32> to vector<8x32xf32>
    %328 = vector.extract_strided_slice %318 {offsets = [0, 96], sizes = [8, 32], strides = [1, 1]} : vector<8x128xf32> to vector<8x32xf32>
    %329 = math.tanh %328 : vector<8x32xf32>
    %330 = arith.mulf %326, %285 : vector<8x32xf32>
    %331 = arith.mulf %325, %329 : vector<8x32xf32>
    %332 = arith.addf %330, %331 : vector<8x32xf32>
    %333 = math.tanh %332 : vector<8x32xf32>
    %334 = arith.mulf %327, %333 : vector<8x32xf32>
    %335 = arith.select %316, %334, %284 : vector<8x32xi1>, vector<8x32xf32>
    %336 = arith.select %316, %332, %285 : vector<8x32xi1>, vector<8x32xf32>
    %c7_i32_62 = arith.constant 7 : i32
    %337 = arith.subi %c7_i32_62, %c6_i32 : i32
    %338 = arith.index_cast %337 : i32 to index
    %c0_63 = arith.constant 0 : index
    %c0_64 = arith.constant 0 : index
    %339 = vector.load %arg2[%338, %c0_63, %c0_64] : memref<8x8x128xf32, #tpu.memory_space<vmem>>, vector<1x8x128xf32>
    %340 = vector.shape_cast %339 : vector<1x8x128xf32> to vector<8x128xf32>
    %341 = vector.broadcast %337 : i32 to vector<8x32xi32>
    %342 = arith.cmpi slt, %341, %4 : vector<8x32xi32>
    %cst_65 = arith.constant dense<0.000000e+00> : vector<8x128xf32>
    %343 = tpu.matmul %310, %1, %cst_65 {dimension_numbers = #tpu.dot_dimension_numbers<[1], [0], [0], [1], [0, 0, 1, 1], [], []>} : vector<8x32xf32>, vector<32x128xf32>, vector<8x128xf32> -> vector<8x128xf32>
    %344 = arith.addf %340, %343 : vector<8x128xf32>
    %345 = vector.extract_strided_slice %344 {offsets = [0, 0], sizes = [8, 96], strides = [1, 1]} : vector<8x128xf32> to vector<8x96xf32>
    %346 = arith.negf %345 : vector<8x96xf32>
    %347 = math.exp %346 : vector<8x96xf32>
    %cst_66 = arith.constant 1.000000e+00 : f32
    %348 = vector.broadcast %cst_66 : f32 to vector<8x96xf32>
    %349 = arith.addf %348, %347 : vector<8x96xf32>
    %350 = arith.divf %348, %349 : vector<8x96xf32>
    %351 = vector.extract_strided_slice %350 {offsets = [0, 0], sizes = [8, 32], strides = [1, 1]} : vector<8x96xf32> to vector<8x32xf32>
    %352 = vector.extract_strided_slice %350 {offsets = [0, 32], sizes = [8, 32], strides = [1, 1]} : vector<8x96xf32> to vector<8x32xf32>
    %353 = vector.extract_strided_slice %350 {offsets = [0, 64], sizes = [8, 32], strides = [1, 1]} : vector<8x96xf32> to vector<8x32xf32>
    %354 = vector.extract_strided_slice %344 {offsets = [0, 96], sizes = [8, 32], strides = [1, 1]} : vector<8x128xf32> to vector<8x32xf32>
    %355 = math.tanh %354 : vector<8x32xf32>
    %356 = arith.mulf %352, %311 : vector<8x32xf32>
    %357 = arith.mulf %351, %355 : vector<8x32xf32>
    %358 = arith.addf %356, %357 : vector<8x32xf32>
    %359 = math.tanh %358 : vector<8x32xf32>
    %360 = arith.mulf %353, %359 : vector<8x32xf32>
    %361 = arith.select %342, %360, %310 : vector<8x32xi1>, vector<8x32xf32>
    %362 = arith.select %342, %358, %311 : vector<8x32xi1>, vector<8x32xf32>
    %c7_i32_67 = arith.constant 7 : i32
    %363 = arith.index_cast %c7_i32_67 : i32 to index
    %c0_68 = arith.constant 0 : index
    %c0_69 = arith.constant 0 : index
    %364 = vector.load %arg1[%363, %c0_68, %c0_69] : memref<8x8x128xf32, #tpu.memory_space<vmem>>, vector<1x8x128xf32>
    %365 = vector.shape_cast %364 : vector<1x8x128xf32> to vector<8x128xf32>
    %366 = vector.broadcast %c7_i32_67 : i32 to vector<8x32xi32>
    %367 = arith.cmpi slt, %366, %4 : vector<8x32xi32>
    %cst_70 = arith.constant dense<0.000000e+00> : vector<8x128xf32>
    %368 = tpu.matmul %335, %0, %cst_70 {dimension_numbers = #tpu.dot_dimension_numbers<[1], [0], [0], [1], [0, 0, 1, 1], [], []>} : vector<8x32xf32>, vector<32x128xf32>, vector<8x128xf32> -> vector<8x128xf32>
    %369 = arith.addf %365, %368 : vector<8x128xf32>
    %370 = vector.extract_strided_slice %369 {offsets = [0, 0], sizes = [8, 96], strides = [1, 1]} : vector<8x128xf32> to vector<8x96xf32>
    %371 = arith.negf %370 : vector<8x96xf32>
    %372 = math.exp %371 : vector<8x96xf32>
    %cst_71 = arith.constant 1.000000e+00 : f32
    %373 = vector.broadcast %cst_71 : f32 to vector<8x96xf32>
    %374 = arith.addf %373, %372 : vector<8x96xf32>
    %375 = arith.divf %373, %374 : vector<8x96xf32>
    %376 = vector.extract_strided_slice %375 {offsets = [0, 0], sizes = [8, 32], strides = [1, 1]} : vector<8x96xf32> to vector<8x32xf32>
    %377 = vector.extract_strided_slice %375 {offsets = [0, 32], sizes = [8, 32], strides = [1, 1]} : vector<8x96xf32> to vector<8x32xf32>
    %378 = vector.extract_strided_slice %375 {offsets = [0, 64], sizes = [8, 32], strides = [1, 1]} : vector<8x96xf32> to vector<8x32xf32>
    %379 = vector.extract_strided_slice %369 {offsets = [0, 96], sizes = [8, 32], strides = [1, 1]} : vector<8x128xf32> to vector<8x32xf32>
    %380 = math.tanh %379 : vector<8x32xf32>
    %381 = arith.mulf %377, %336 : vector<8x32xf32>
    %382 = arith.mulf %376, %380 : vector<8x32xf32>
    %383 = arith.addf %381, %382 : vector<8x32xf32>
    %384 = math.tanh %383 : vector<8x32xf32>
    %385 = arith.mulf %378, %384 : vector<8x32xf32>
    %386 = arith.select %367, %385, %335 : vector<8x32xi1>, vector<8x32xf32>
    %387 = arith.select %367, %383, %336 : vector<8x32xi1>, vector<8x32xf32>
    %c7_i32_72 = arith.constant 7 : i32
    %388 = arith.subi %c7_i32_72, %c7_i32_67 : i32
    %389 = arith.index_cast %388 : i32 to index
    %c0_73 = arith.constant 0 : index
    %c0_74 = arith.constant 0 : index
    %390 = vector.load %arg2[%389, %c0_73, %c0_74] : memref<8x8x128xf32, #tpu.memory_space<vmem>>, vector<1x8x128xf32>
    %391 = vector.shape_cast %390 : vector<1x8x128xf32> to vector<8x128xf32>
    %392 = vector.broadcast %388 : i32 to vector<8x32xi32>
    %393 = arith.cmpi slt, %392, %4 : vector<8x32xi32>
    %cst_75 = arith.constant dense<0.000000e+00> : vector<8x128xf32>
    %394 = tpu.matmul %361, %1, %cst_75 {dimension_numbers = #tpu.dot_dimension_numbers<[1], [0], [0], [1], [0, 0, 1, 1], [], []>} : vector<8x32xf32>, vector<32x128xf32>, vector<8x128xf32> -> vector<8x128xf32>
    %395 = arith.addf %391, %394 : vector<8x128xf32>
    %396 = vector.extract_strided_slice %395 {offsets = [0, 0], sizes = [8, 96], strides = [1, 1]} : vector<8x128xf32> to vector<8x96xf32>
    %397 = arith.negf %396 : vector<8x96xf32>
    %398 = math.exp %397 : vector<8x96xf32>
    %cst_76 = arith.constant 1.000000e+00 : f32
    %399 = vector.broadcast %cst_76 : f32 to vector<8x96xf32>
    %400 = arith.addf %399, %398 : vector<8x96xf32>
    %401 = arith.divf %399, %400 : vector<8x96xf32>
    %402 = vector.extract_strided_slice %401 {offsets = [0, 0], sizes = [8, 32], strides = [1, 1]} : vector<8x96xf32> to vector<8x32xf32>
    %403 = vector.extract_strided_slice %401 {offsets = [0, 32], sizes = [8, 32], strides = [1, 1]} : vector<8x96xf32> to vector<8x32xf32>
    %404 = vector.extract_strided_slice %401 {offsets = [0, 64], sizes = [8, 32], strides = [1, 1]} : vector<8x96xf32> to vector<8x32xf32>
    %405 = vector.extract_strided_slice %395 {offsets = [0, 96], sizes = [8, 32], strides = [1, 1]} : vector<8x128xf32> to vector<8x32xf32>
    %406 = math.tanh %405 : vector<8x32xf32>
    %407 = arith.mulf %403, %362 : vector<8x32xf32>
    %408 = arith.mulf %402, %406 : vector<8x32xf32>
    %409 = arith.addf %407, %408 : vector<8x32xf32>
    %410 = math.tanh %409 : vector<8x32xf32>
    %411 = arith.mulf %404, %410 : vector<8x32xf32>
    %412 = arith.select %393, %411, %361 : vector<8x32xi1>, vector<8x32xf32>
    %413 = arith.select %393, %409, %362 : vector<8x32xi1>, vector<8x32xf32>
    %c8_i32 = arith.constant 8 : i32
    %414 = tpu.concatenate %386, %412 in 1 : vector<8x32xf32>, vector<8x32xf32> -> vector<8x64xf32>
    %c0_77 = arith.constant 0 : index
    %c0_78 = arith.constant 0 : index
    %415 = vector.load %arg6[%c0_77, %c0_78] : memref<8x64xf32, #tpu.memory_space<vmem>>, vector<8x64xf32>
    tpu.vector_store %arg6[%c0_77, %c0_78], %414 {strides = array<i32>} : memref<8x64xf32, #tpu.memory_space<vmem>>, vector<8x64xf32>,
    return
  }
  func.func @transform_0(%arg0: i32) -> (i32, i32, i32) {
    %c0_i32 = arith.constant 0 : i32
    %c0_i32_0 = arith.constant 0 : i32
    %c0_i32_1 = arith.constant 0 : i32
    return %c0_i32, %arg0, %c0_i32_0 : i32, i32, i32
  }
  func.func @transform_1(%arg0: i32) -> (i32, i32, i32) {
    %c0_i32 = arith.constant 0 : i32
    %c0_i32_0 = arith.constant 0 : i32
    %c0_i32_1 = arith.constant 0 : i32
    return %c0_i32, %arg0, %c0_i32_0 : i32, i32, i32
  }
  func.func @transform_2(%arg0: i32) -> (i32, i32) {
    %c0_i32 = arith.constant 0 : i32
    %c0_i32_0 = arith.constant 0 : i32
    return %arg0, %c0_i32 : i32, i32
  }
  func.func @transform_3(%arg0: i32) -> (i32, i32) {
    %c0_i32 = arith.constant 0 : i32
    %c0_i32_0 = arith.constant 0 : i32
    %c0_i32_1 = arith.constant 0 : i32
    return %c0_i32, %c0_i32_0 : i32, i32
  }
  func.func @transform_4(%arg0: i32) -> (i32, i32) {
    %c0_i32 = arith.constant 0 : i32
    %c0_i32_0 = arith.constant 0 : i32
    %c0_i32_1 = arith.constant 0 : i32
    return %c0_i32, %c0_i32_0 : i32, i32
  }
  func.func @transform_5(%arg0: i32) -> (i32, i32) {
    %c0_i32 = arith.constant 0 : i32
    %c0_i32_0 = arith.constant 0 : i32
    return %arg0, %c0_i32 : i32, i32
  }
}

</mosaic_0001>

<bundles_post_ra>
// kernel: bilstm_forward.1
= control target key start
LH: loop header
LB: loop body
LE: loop exit
PB: predicated region body
PF: predicated region fallthrough
CT: control target
= control target key end

     0   :  { %v2241_v0 = vmov 0.0|0.0   ;;  %vm2242_vm0 = vmmov 0   ;;  %v2243_v8 = vmov 0.0   ;;  %v2244_v14 = vmov 0   ;;  %s2245_s11 = smov 32   ;;  %s2746_s3 = inlined_call_operand.vmem [shape: f32[32,128], index: 3, kind: input, shape index: {}]   ;;  %s2747_s4 = inlined_call_operand.vmem [shape: f32[32,128], index: 4, kind: input, shape index: {}]   ;;  %s2748_s0 = inlined_call_operand.vmem [shape: f32[8,8,128], index: 0, kind: input, shape index: {}]   ;;  %s2749_s1 = inlined_call_operand.vmem [shape: f32[8,8,128], index: 1, kind: input, shape index: {}]   ;;  %s2750_s2 = inlined_call_operand.vmem [shape: s32[8,1], index: 2, kind: input, shape index: {}]   ;;  %s2751_s5 = inlined_call_operand.vmem [shape: f32[8,64], index: 5, kind: output, shape index: {}]  }
   0x1   :  { %2009 = vmatprep.subr.bf16.mxu0 %v2241_v0  ;;  %v20_v1 = vld [vmem:[%s2746_s3] sm:$0xff]  ;;  %v21_v2 = vld [vmem:[%s2746_s3 + $0x8] sm:$0xff]  ;;  %2015 = vmatprep.subr.bf16.mxu1 %v2241_v0  ;;  %v22_v6 = vld [vmem:[%s2746_s3 + $0x10] sm:$0xff]  ;;  %vm34_vm3 = vcmask 261120   ;;  %vm1703_vm10 = vcmask 523264  }
   0x2   :  { %v24_v3 = vld [vmem:[%s2747_s4] sm:$0xff]  ;;  %v2289_v4 = vpack.c.bf16 %v21_v2, %v20_v1  ;;  %v25_v5 = vld [vmem:[%s2747_s4 + $0x8] sm:$0xff]  ;;  %v23_v7 = vld [vmem:[%s2746_s3 + $0x18] sm:$0xff]  ;;  %1841 = vmatprep.mubr.msk.f32.mxu0 %vm2242_vm0, %v2243_v8  ;;  %1852 = vmatprep.mubr.msk.f32.mxu1 %vm2242_vm0, %v2243_v8 }
   0x3   :  { %v2304_v9 = vpack.c.bf16 %v25_v5, %v24_v3  ;;  %v26_v10 = vld [vmem:[%s2747_s4 + $0x10] sm:$0xff]  ;;  %v27_v11 = vld [vmem:[%s2747_s4 + $0x18] sm:$0xff]  ;;  %v2313_v12 = vpack.c.bf16 %v23_v7, %v22_v6  ;;  %2112 = vset.pattern.permute.xlu0 %v2244_v14  ;;  %v32_v15 = vld [vmem:[%s2748_s0] sm:$0xff] }
   0x4   :  { %2011 = vmatpush3.bf16.msra.mxu0 %v2289_v4  ;;  %v2317_v13 = vpack.c.bf16 %v27_v11, %v26_v10  ;;  %v1710_v16 = vld [vmem:[%s2749_s1 + $0x38] sm:$0xff]  ;;  %v28_v25 = vld [vmem:[%s2750_s2] sm:$0xff]  ;;  %s2246_s2 = smov 64   ;;  %v1712_v55 = vld [vmem:[%s2748_s0 + $0x8] sm:$0xff] }
   0x5   :  { %2012 = vmatprep.subr.bf16.mxu0 %v2241_v0  ;;  %2017 = vmatpush3.bf16.msra.mxu1 %v2304_v9  ;;  %v1715_v59 = vld [vmem:[%s2749_s1 + $0x30] sm:$0xff] }
   0x6   :  { %2018 = vmatprep.subr.bf16.mxu1 %v2241_v0 }
   0x8   :  { %2014 = vmatpush3.bf16.msra.mxu0 %v2313_v12 }
   0x9   :  { %2020 = vmatpush3.bf16.msra.mxu1 %v2317_v13  ;;  %2021 = vmatprep.subr.bf16.mxu0 %v2241_v0 }
   0xa   :  { %2027 = vmatprep.subr.bf16.mxu1 %v2241_v0 }
   0xb   :  { %1842 = vmatmul.mubr.f32.vlgmr.msra.gmra.mrb[0].mxu0 %v2243_v8 }
   0xc   :  { %1853 = vmatmul.mubr.f32.vlgmr.msra.gmra.mrb[0].mxu1 %v2243_v8  ;;  %2023 = vmatpush3.bf16.msra.mxu0 %v2289_v4 }
   0xd   :  { %2024 = vmatprep.subr.bf16.mxu0 %v2241_v0  ;;  %2029 = vmatpush3.bf16.msra.mxu1 %v2304_v9 }
   0xe   :  { %1863 = vmatprep.mubr.msk.f32.mxu0 %vm2242_vm0, %v2243_v8  ;;  %2030 = vmatprep.subr.bf16.mxu1 %v2241_v0 }
   0xf   :  { %1874 = vmatprep.mubr.msk.f32.mxu1 %vm2242_vm0, %v2243_v8 }
  0x10   :  { %2026 = vmatpush3.bf16.msra.mxu0 %v2313_v12 }
  0x11   :  { %2032 = vmatpush3.bf16.msra.mxu1 %v2317_v13  ;;  %2033 = vmatprep.subr.bf16.mxu0 %v2241_v0 }
  0x12   :  { %2039 = vmatprep.subr.bf16.mxu1 %v2241_v0 }
  0xde   :  { %v104_v17 = vpop.f32.mrb[0].mxu0 }
  0xdf   :  { %v108_v18 = vadd.f32 %v104_v17, %v32_v15  ;;  %v1843_v19 = vpop.f32.mrb[1].mxu0  ;;  %v204_v20 = vpop.f32.mrb[0].mxu1 }
  0xe0   :  { %v208_v21 = vadd.f32 %v1710_v16, %v204_v20  ;;  %v1854_v22 = vpop.f32.mrb[1].mxu1 }
  0xe1   :  { %2113 = vtanh.f32 %v108_v18  ;;  %v1709_v26 = vmul.f32 -1.442695, %v108_v18 }
  0xe2   :  { %2115 = vtanh.f32 %v208_v21  ;;  %v1711_v27 = vmul.f32 -1.442695, %v208_v21 }
  0xe3   :  { %2117 = vpow2.f32 %v1709_v26 }
  0xe4   :  { %2119 = vpow2.f32 %v1711_v27 }
  0xeb   :  { %v2114_v23 = vpop.eup %2113 }
  0xec   :  { %118 = vrot.lane.b32.xlu0 %v2114_v23, %s2245_s11  ;;  %v2116_v24 = vpop.eup %2115 }
  0xed   :  { %v2118_v28 = vpop.eup %2117 }
  0xee   :  { %v112_v29 = vadd.f32 1.0, %v2118_v28  ;;  %v2120_v30 = vpop.eup %2119 }
  0xef   :  { %v212_v31 = vadd.f32 1.0, %v2120_v30 }
  0xf0   :  { %218 = vrot.lane.b32.xlu0 %v2116_v24, %s2245_s11  ;;  %2121 = vrcp.f32 %v112_v29 }
  0xf1   :  { %2123 = vrcp.f32 %v212_v31 }
  0xf4   :  { %30 = vperm.xlu0 %2112, %v28_v25  }
  0xfa   :  { %v2122_v32 = vpop.eup %2121 }
  0xfb   :  { %v2124_v35 = vpop.eup %2123  ;;  %v116_v38 = vmul.f32 0.0, %v2122_v32 }
  0xfc   :  { %v216_v41 = vmul.f32 0.0, %v2124_v35 }
 0x15e   :  { %v119_v33 = vpop.permute.xlu0 %118 }
 0x15f   :  { %v121_v34 = vmul.f32 %v2122_v32, %v119_v33 }
 0x161   :  { %123 = vrot.lane.b32.xlu1 %v121_v34, %s2245_s11 }
 0x162   :  { %v219_v36 = vpop.permute.xlu0 %218 }
 0x163   :  { %v221_v37 = vmul.f32 %v2124_v35, %v219_v36 }
 0x165   :  { %223 = vrot.lane.b32.xlu1 %v221_v37, %s2245_s11  ;;  %v1718_v37 = vld [vmem:[%s2748_s0 + $0x10] sm:$0xff] }
 0x173   :  { %v2359_v46 = vpop.permute.xlu0 %30 }
 0x174   :  { %vm33_vm1 = vcmp.gt.s32.totalorder %v2359_v46, 0  ;;  %vm137_vm2 = vcmp.gt.s32.totalorder %v2359_v46, 7  ;;  %vm237_vm4 = vcmp.gt.s32.totalorder %v2359_v46, 1  ;;  %vm342_vm5 = vcmp.gt.s32.totalorder %v2359_v46, 6 }
 0x175   :  { %vm447_vm6 = vcmp.gt.s32.totalorder %v2359_v46, 2  ;;  %vm552_vm7 = vcmp.gt.s32.totalorder %v2359_v46, 5  ;;  %vm657_vm8 = vcmp.gt.s32.totalorder %v2359_v46, 3  ;;  %vm762_vm9 = vcmp.gt.s32.totalorder %v2359_v46, 4 }
 0x1d3   :  { %v124_v39 = vpop.permute.xlu1 %123 }
 0x1d4   :  { %v2351_v40 = vadd.f32 %v124_v39, %v116_v38 }
 0x1d6   :  { %2125 = vtanh.f32 %v2351_v40  ;;  %v2402_v19 = vsel %vm33_vm1, %v2351_v40, 0.0 }
 0x1d7   :  { %v224_v42 = vpop.permute.xlu1 %223 }
 0x1d8   :  { %v2354_v43 = vadd.f32 %v224_v42, %v216_v41  ;;  %v1721_v41 = vld [vmem:[%s2749_s1 + $0x28] sm:$0xff] }
 0x1da   :  { %2127 = vtanh.f32 %v2354_v43  ;;  %v2410_v23 = vsel %vm137_vm2, %v2354_v43, 0.0 }
 0x1e0   :  { %v2126_v44 = vpop.eup %2125 }
 0x1e1   :  { %129 = vrot.lane.b32.xlu1 %v2126_v44, %s2245_s11 }
 0x1e4   :  { %v2128_v45 = vpop.eup %2127 }
 0x1e5   :  { %229 = vrot.lane.b32.xlu1 %v2128_v45, %s2245_s11 }
 0x253   :  { %v130_v47 = vpop.permute.xlu1 %129 }
 0x254   :  { %v132_v48 = vmul.f32 %v2122_v32, %v130_v47 }
 0x256   :  { %v2364_v49 = vsel %vm33_vm1, %v132_v48, 0.0 }
 0x257   :  { %239 = vrot.lane.b32.xlu0 %v2364_v49, %s2246_s2  ;;  %v230_v50 = vpop.permute.xlu1 %229 }
 0x258   :  { %v232_v51 = vmul.f32 %v2124_v35, %v230_v50 }
 0x25a   :  { %v2371_v52 = vsel %vm137_vm2, %v232_v51, 0.0 }
 0x25b   :  { %344 = vrot.lane.b32.xlu1 %v2371_v52, %s2246_s2 }
 0x2c9   :  { %v240_v53 = vpop.permute.xlu0 %239 }
 0x2ca   :  { %1864 = vmatmul.mubr.msk.f32.vlgmr.msra.gmra.mrb[2].mxu0 %vm34_vm3, %v240_v53 }
 0x2cb   :  { %2035 = vmatpush3.bf16.msra.mxu0 %v2289_v4  ;;  %1885 = vmatprep.mubr.msk.f32.mxu0 %vm2242_vm0, %v2243_v8 }
 0x2cc   :  { %2036 = vmatprep.subr.bf16.mxu0 %v2241_v0 }
 0x2cd   :  { %v345_v54 = vpop.permute.xlu1 %344 }
 0x2ce   :  { %1875 = vmatmul.mubr.msk.f32.vlgmr.msra.gmra.mrb[2].mxu1 %vm34_vm3, %v345_v54 }
 0x2cf   :  { %2038 = vmatpush3.bf16.msra.mxu0 %v2313_v12  ;;  %2041 = vmatpush3.bf16.msra.mxu1 %v2304_v9 }
 0x2d0   :  { %2042 = vmatprep.subr.bf16.mxu1 %v2241_v0  ;;  %1896 = vmatprep.mubr.msk.f32.mxu1 %vm2242_vm0, %v2243_v8 }
 0x2d1   :  { %2045 = vmatprep.subr.bf16.mxu0 %v2241_v0 }
 0x2d3   :  { %2044 = vmatpush3.bf16.msra.mxu1 %v2317_v13 }
 0x2d4   :  { %2051 = vmatprep.subr.bf16.mxu1 %v2241_v0 }
 0x39d   :  { %v309_v56 = vpop.f32.mrb[2].mxu0 }
 0x39e   :  { %v313_v57 = vadd.f32 %v1712_v55, %v309_v56  ;;  %v1865_v58 = vpop.f32.mrb[3].mxu0 }
 0x3a0   :  { %2129 = vtanh.f32 %v313_v57  ;;  %v1714_v2 = vmul.f32 -1.442695, %v313_v57 }
 0x3a1   :  { %v414_v60 = vpop.f32.mrb[2].mxu1 }
 0x3a2   :  { %v418_v61 = vadd.f32 %v1715_v59, %v414_v60  ;;  %v1876_v62 = vpop.f32.mrb[3].mxu1 }
 0x3a4   :  { %2131 = vtanh.f32 %v418_v61  ;;  %v1717_v3 = vmul.f32 -1.442695, %v418_v61 }
 0x3a5   :  { %2133 = vpow2.f32 %v1714_v2 }
 0x3a6   :  { %2135 = vpow2.f32 %v1717_v3 }
 0x3aa   :  { %v2130_v63 = vpop.eup %2129 }
 0x3ab   :  { %323 = vrot.lane.b32.xlu0 %v2130_v63, %s2245_s11 }
 0x3ae   :  { %v2132_v1 = vpop.eup %2131 }
 0x3af   :  { %428 = vrot.lane.b32.xlu1 %v2132_v1, %s2245_s11  ;;  %v2134_v5 = vpop.eup %2133 }
 0x3b0   :  { %v317_v6 = vadd.f32 1.0, %v2134_v5  ;;  %v2136_v7 = vpop.eup %2135 }
 0x3b1   :  { %v422_v10 = vadd.f32 1.0, %v2136_v7 }
 0x3b2   :  { %2137 = vrcp.f32 %v317_v6 }
 0x3b3   :  { %2139 = vrcp.f32 %v422_v10 }
 0x3bc   :  { %v2138_v11 = vpop.eup %2137 }
 0x3bd   :  { %v2140_v16 = vpop.eup %2139  ;;  %v321_v20 = vmul.f32 %v2138_v11, %v2402_v19 }
 0x3be   :  { %v426_v24 = vmul.f32 %v2140_v16, %v2410_v23 }
 0x41d   :  { %v324_v14 = vpop.permute.xlu0 %323 }
 0x41e   :  { %v326_v15 = vmul.f32 %v2138_v11, %v324_v14 }
 0x420   :  { %328 = vrot.lane.b32.xlu0 %v326_v15, %s2245_s11 }
 0x421   :  { %v429_v17 = vpop.permute.xlu1 %428 }
 0x422   :  { %v431_v18 = vmul.f32 %v2140_v16, %v429_v17 }
 0x424   :  { %433 = vrot.lane.b32.xlu1 %v431_v18, %s2245_s11 }
 0x492   :  { %v329_v21 = vpop.permute.xlu0 %328 }
 0x493   :  { %v2405_v22 = vadd.f32 %v329_v21, %v321_v20  ;;  %v1724_v20 = vld [vmem:[%s2748_s0 + $0x18] sm:$0xff] }
 0x495   :  { %2141 = vtanh.f32 %v2405_v22  ;;  %v2463_v60 = vsel %vm237_vm4, %v2405_v22, %v2402_v19 }
 0x496   :  { %v434_v25 = vpop.permute.xlu1 %433 }
 0x497   :  { %v2414_v26 = vadd.f32 %v434_v25, %v426_v24  ;;  %v1727_v24 = vld [vmem:[%s2749_s1 + $0x20] sm:$0xff] }
 0x499   :  { %2143 = vtanh.f32 %v2414_v26  ;;  %v2472_v1 = vsel %vm342_vm5, %v2414_v26, %v2410_v23 }
 0x49f   :  { %v2142_v27 = vpop.eup %2141 }
 0x4a0   :  { %334 = vrot.lane.b32.xlu0 %v2142_v27, %s2245_s11 }
 0x4a3   :  { %v2144_v28 = vpop.eup %2143 }
 0x4a4   :  { %439 = vrot.lane.b32.xlu1 %v2144_v28, %s2245_s11 }
 0x512   :  { %v335_v29 = vpop.permute.xlu0 %334 }
 0x513   :  { %v337_v30 = vmul.f32 %v2138_v11, %v335_v29 }
 0x515   :  { %v2423_v31 = vsel %vm237_vm4, %v337_v30, %v2364_v49 }
 0x516   :  { %449 = vrot.lane.b32.xlu0 %v2423_v31, %s2246_s2  ;;  %v440_v32 = vpop.permute.xlu1 %439 }
 0x517   :  { %v442_v33 = vmul.f32 %v2140_v16, %v440_v32 }
 0x519   :  { %v2431_v34 = vsel %vm342_vm5, %v442_v33, %v2371_v52 }
 0x51a   :  { %554 = vrot.lane.b32.xlu1 %v2431_v34, %s2246_s2 }
 0x588   :  { %v450_v35 = vpop.permute.xlu0 %449 }
 0x589   :  { %1886 = vmatmul.mubr.msk.f32.vlgmr.msra.gmra.mrb[4].mxu0 %vm34_vm3, %v450_v35 }
 0x58a   :  { %2047 = vmatpush3.bf16.msra.mxu0 %v2289_v4  ;;  %1907 = vmatprep.mubr.msk.f32.mxu0 %vm2242_vm0, %v2243_v8 }
 0x58b   :  { %2048 = vmatprep.subr.bf16.mxu0 %v2241_v0 }
 0x58c   :  { %v555_v36 = vpop.permute.xlu1 %554 }
 0x58d   :  { %1897 = vmatmul.mubr.msk.f32.vlgmr.msra.gmra.mrb[4].mxu1 %vm34_vm3, %v555_v36 }
 0x58e   :  { %2050 = vmatpush3.bf16.msra.mxu0 %v2313_v12  ;;  %2053 = vmatpush3.bf16.msra.mxu1 %v2304_v9 }
 0x58f   :  { %2054 = vmatprep.subr.bf16.mxu1 %v2241_v0  ;;  %1918 = vmatprep.mubr.msk.f32.mxu1 %vm2242_vm0, %v2243_v8 }
 0x590   :  { %2057 = vmatprep.subr.bf16.mxu0 %v2241_v0 }
 0x592   :  { %2056 = vmatpush3.bf16.msra.mxu1 %v2317_v13 }
 0x593   :  { %2063 = vmatprep.subr.bf16.mxu1 %v2241_v0 }
 0x65c   :  { %v519_v38 = vpop.f32.mrb[4].mxu0 }
 0x65d   :  { %v523_v39 = vadd.f32 %v1718_v37, %v519_v38  ;;  %v1887_v40 = vpop.f32.mrb[5].mxu0 }
 0x65f   :  { %2145 = vtanh.f32 %v523_v39  ;;  %v1720_v48 = vmul.f32 -1.442695, %v523_v39 }
 0x660   :  { %v624_v42 = vpop.f32.mrb[4].mxu1 }
 0x661   :  { %v628_v43 = vadd.f32 %v1721_v41, %v624_v42  ;;  %v1898_v44 = vpop.f32.mrb[5].mxu1 }
 0x663   :  { %2147 = vtanh.f32 %v628_v43  ;;  %v1723_v49 = vmul.f32 -1.442695, %v628_v43 }
 0x664   :  { %2149 = vpow2.f32 %v1720_v48 }
 0x665   :  { %2151 = vpow2.f32 %v1723_v49 }
 0x669   :  { %v2146_v45 = vpop.eup %2145 }
 0x66a   :  { %533 = vrot.lane.b32.xlu0 %v2146_v45, %s2245_s11 }
 0x66d   :  { %v2148_v47 = vpop.eup %2147 }
 0x66e   :  { %638 = vrot.lane.b32.xlu1 %v2148_v47, %s2245_s11  ;;  %v2150_v50 = vpop.eup %2149 }
 0x66f   :  { %v527_v51 = vadd.f32 1.0, %v2150_v50  ;;  %v2152_v52 = vpop.eup %2151 }
 0x670   :  { %v632_v53 = vadd.f32 1.0, %v2152_v52 }
 0x671   :  { %2153 = vrcp.f32 %v527_v51 }
 0x672   :  { %2155 = vrcp.f32 %v632_v53 }
 0x67b   :  { %v2154_v54 = vpop.eup %2153 }
 0x67c   :  { %v2156_v57 = vpop.eup %2155  ;;  %v531_v61 = vmul.f32 %v2154_v54, %v2463_v60 }
 0x67d   :  { %v636_v2 = vmul.f32 %v2156_v57, %v2472_v1 }
 0x6dc   :  { %v534_v55 = vpop.permute.xlu0 %533 }
 0x6dd   :  { %v536_v56 = vmul.f32 %v2154_v54, %v534_v55 }
 0x6df   :  { %538 = vrot.lane.b32.xlu0 %v536_v56, %s2245_s11 }
 0x6e0   :  { %v639_v58 = vpop.permute.xlu1 %638 }
 0x6e1   :  { %v641_v59 = vmul.f32 %v2156_v57, %v639_v58 }
 0x6e3   :  { %643 = vrot.lane.b32.xlu1 %v641_v59, %s2245_s11 }
 0x751   :  { %v539_v62 = vpop.permute.xlu0 %538 }
 0x752   :  { %v2466_v63 = vadd.f32 %v539_v62, %v531_v61  ;;  %v1730_v61 = vld [vmem:[%s2748_s0 + $0x20] sm:$0xff] }
 0x754   :  { %2157 = vtanh.f32 %v2466_v63  ;;  %v2525_v42 = vsel %vm447_vm6, %v2466_v63, %v2463_v60 }
 0x755   :  { %v644_v3 = vpop.permute.xlu1 %643 }
 0x756   :  { %v2476_v5 = vadd.f32 %v644_v3, %v636_v2  ;;  %v1733_v2 = vld [vmem:[%s2749_s1 + $0x18] sm:$0xff] }
 0x758   :  { %2159 = vtanh.f32 %v2476_v5  ;;  %v2534_v47 = vsel %vm552_vm7, %v2476_v5, %v2472_v1 }
 0x75e   :  { %v2158_v6 = vpop.eup %2157 }
 0x75f   :  { %544 = vrot.lane.b32.xlu0 %v2158_v6, %s2245_s11 }
 0x762   :  { %v2160_v7 = vpop.eup %2159 }
 0x763   :  { %649 = vrot.lane.b32.xlu1 %v2160_v7, %s2245_s11 }
 0x7d1   :  { %v545_v10 = vpop.permute.xlu0 %544 }
 0x7d2   :  { %v547_v11 = vmul.f32 %v2154_v54, %v545_v10 }
 0x7d4   :  { %v2485_v14 = vsel %vm447_vm6, %v547_v11, %v2423_v31 }
 0x7d5   :  { %659 = vrot.lane.b32.xlu0 %v2485_v14, %s2246_s2  ;;  %v650_v15 = vpop.permute.xlu1 %649 }
 0x7d6   :  { %v652_v16 = vmul.f32 %v2156_v57, %v650_v15 }
 0x7d8   :  { %v2493_v17 = vsel %vm552_vm7, %v652_v16, %v2431_v34 }
 0x7d9   :  { %764 = vrot.lane.b32.xlu1 %v2493_v17, %s2246_s2 }
 0x847   :  { %v660_v18 = vpop.permute.xlu0 %659 }
 0x848   :  { %1908 = vmatmul.mubr.msk.f32.vlgmr.msra.gmra.mrb[6].mxu0 %vm34_vm3, %v660_v18 }
 0x849   :  { %2059 = vmatpush3.bf16.msra.mxu0 %v2289_v4  ;;  %1929 = vmatprep.mubr.msk.f32.mxu0 %vm2242_vm0, %v2243_v8 }
 0x84a   :  { %2060 = vmatprep.subr.bf16.mxu0 %v2241_v0 }
 0x84b   :  { %v765_v19 = vpop.permute.xlu1 %764 }
 0x84c   :  { %1919 = vmatmul.mubr.msk.f32.vlgmr.msra.gmra.mrb[6].mxu1 %vm34_vm3, %v765_v19 }
 0x84d   :  { %2062 = vmatpush3.bf16.msra.mxu0 %v2313_v12  ;;  %2065 = vmatpush3.bf16.msra.mxu1 %v2304_v9 }
 0x84e   :  { %2066 = vmatprep.subr.bf16.mxu1 %v2241_v0  ;;  %1940 = vmatprep.mubr.msk.f32.mxu1 %vm2242_vm0, %v2243_v8 }
 0x84f   :  { %2069 = vmatprep.subr.bf16.mxu0 %v2241_v0 }
 0x851   :  { %2068 = vmatpush3.bf16.msra.mxu1 %v2317_v13 }
 0x852   :  { %2075 = vmatprep.subr.bf16.mxu1 %v2241_v0 }
 0x91b   :  { %v729_v21 = vpop.f32.mrb[6].mxu0 }
 0x91c   :  { %v733_v22 = vadd.f32 %v1724_v20, %v729_v21  ;;  %v1909_v23 = vpop.f32.mrb[7].mxu0 }
 0x91e   :  { %2161 = vtanh.f32 %v733_v22  ;;  %v1726_v30 = vmul.f32 -1.442695, %v733_v22 }
 0x91f   :  { %v834_v25 = vpop.f32.mrb[6].mxu1 }
 0x920   :  { %v838_v26 = vadd.f32 %v1727_v24, %v834_v25  ;;  %v1920_v27 = vpop.f32.mrb[7].mxu1 }
 0x922   :  { %2163 = vtanh.f32 %v838_v26  ;;  %v1729_v31 = vmul.f32 -1.442695, %v838_v26 }
 0x923   :  { %2165 = vpow2.f32 %v1726_v30 }
 0x924   :  { %2167 = vpow2.f32 %v1729_v31 }
 0x928   :  { %v2162_v28 = vpop.eup %2161 }
 0x929   :  { %743 = vrot.lane.b32.xlu0 %v2162_v28, %s2245_s11 }
 0x92c   :  { %v2164_v29 = vpop.eup %2163 }
 0x92d   :  { %848 = vrot.lane.b32.xlu1 %v2164_v29, %s2245_s11  ;;  %v2166_v32 = vpop.eup %2165 }
 0x92e   :  { %v737_v33 = vadd.f32 1.0, %v2166_v32  ;;  %v2168_v34 = vpop.eup %2167 }
 0x92f   :  { %v842_v35 = vadd.f32 1.0, %v2168_v34 }
 0x930   :  { %2169 = vrcp.f32 %v737_v33 }
 0x931   :  { %2171 = vrcp.f32 %v842_v35 }
 0x93a   :  { %v2170_v36 = vpop.eup %2169 }
 0x93b   :  { %v2172_v39 = vpop.eup %2171  ;;  %v741_v43 = vmul.f32 %v2170_v36, %v2525_v42 }
 0x93c   :  { %v846_v48 = vmul.f32 %v2172_v39, %v2534_v47 }
 0x99b   :  { %v744_v37 = vpop.permute.xlu0 %743 }
 0x99c   :  { %v746_v38 = vmul.f32 %v2170_v36, %v744_v37 }
 0x99e   :  { %748 = vrot.lane.b32.xlu0 %v746_v38, %s2245_s11 }
 0x99f   :  { %v849_v40 = vpop.permute.xlu1 %848 }
 0x9a0   :  { %v851_v41 = vmul.f32 %v2172_v39, %v849_v40 }
 0x9a2   :  { %853 = vrot.lane.b32.xlu1 %v851_v41, %s2245_s11 }
 0xa10   :  { %v749_v44 = vpop.permute.xlu0 %748 }
 0xa11   :  { %v2528_v45 = vadd.f32 %v749_v44, %v741_v43  ;;  %v1736_v43 = vld [vmem:[%s2748_s0 + $0x28] sm:$0xff] }
 0xa13   :  { %2173 = vtanh.f32 %v2528_v45  ;;  %v2587_v25 = vsel %vm657_vm8, %v2528_v45, %v2525_v42 }
 0xa14   :  { %v854_v49 = vpop.permute.xlu1 %853 }
 0xa15   :  { %v2538_v50 = vadd.f32 %v854_v49, %v846_v48  ;;  %v1739_v48 = vld [vmem:[%s2749_s1 + $0x10] sm:$0xff] }
 0xa17   :  { %2175 = vtanh.f32 %v2538_v50  ;;  %v2596_v29 = vsel %vm762_vm9, %v2538_v50, %v2534_v47 }
 0xa1d   :  { %v2174_v51 = vpop.eup %2173 }
 0xa1e   :  { %754 = vrot.lane.b32.xlu0 %v2174_v51, %s2245_s11 }
 0xa21   :  { %v2176_v52 = vpop.eup %2175 }
 0xa22   :  { %859 = vrot.lane.b32.xlu1 %v2176_v52, %s2245_s11 }
 0xa90   :  { %v755_v53 = vpop.permute.xlu0 %754 }
 0xa91   :  { %v757_v54 = vmul.f32 %v2170_v36, %v755_v53 }
 0xa93   :  { %v2547_v55 = vsel %vm657_vm8, %v757_v54, %v2485_v14 }
 0xa94   :  { %868 = vrot.lane.b32.xlu0 %v2547_v55, %s2246_s2  ;;  %v860_v56 = vpop.permute.xlu1 %859 }
 0xa95   :  { %v862_v57 = vmul.f32 %v2172_v39, %v860_v56 }
 0xa97   :  { %v2555_v58 = vsel %vm762_vm9, %v862_v57, %v2493_v17 }
 0xa98   :  { %972 = vrot.lane.b32.xlu1 %v2555_v58, %s2246_s2 }
 0xb06   :  { %v869_v59 = vpop.permute.xlu0 %868 }
 0xb07   :  { %1930 = vmatmul.mubr.msk.f32.vlgmr.msra.gmra.mrb[8].mxu0 %vm34_vm3, %v869_v59 }
 0xb08   :  { %2071 = vmatpush3.bf16.msra.mxu0 %v2289_v4  ;;  %1951 = vmatprep.mubr.msk.f32.mxu0 %vm2242_vm0, %v2243_v8 }
 0xb09   :  { %2072 = vmatprep.subr.bf16.mxu0 %v2241_v0 }
 0xb0a   :  { %v973_v60 = vpop.permute.xlu1 %972 }
 0xb0b   :  { %1941 = vmatmul.mubr.msk.f32.vlgmr.msra.gmra.mrb[8].mxu1 %vm34_vm3, %v973_v60 }
 0xb0c   :  { %2074 = vmatpush3.bf16.msra.mxu0 %v2313_v12  ;;  %2077 = vmatpush3.bf16.msra.mxu1 %v2304_v9 }
 0xb0d   :  { %2078 = vmatprep.subr.bf16.mxu1 %v2241_v0  ;;  %1962 = vmatprep.mubr.msk.f32.mxu1 %vm2242_vm0, %v2243_v8 }
 0xb0e   :  { %2081 = vmatprep.subr.bf16.mxu0 %v2241_v0 }
 0xb10   :  { %2080 = vmatpush3.bf16.msra.mxu1 %v2317_v13 }
 0xb11   :  { %2087 = vmatprep.subr.bf16.mxu1 %v2241_v0 }
 0xbda   :  { %v938_v62 = vpop.f32.mrb[8].mxu0 }
 0xbdb   :  { %v942_v63 = vadd.f32 %v1730_v61, %v938_v62  ;;  %v1931_v1 = vpop.f32.mrb[9].mxu0 }
 0xbdd   :  { %2177 = vtanh.f32 %v942_v63  ;;  %v1732_v11 = vmul.f32 -1.442695, %v942_v63 }
 0xbde   :  { %v1042_v3 = vpop.f32.mrb[8].mxu1 }
 0xbdf   :  { %v1046_v5 = vadd.f32 %v1733_v2, %v1042_v3  ;;  %v1942_v6 = vpop.f32.mrb[9].mxu1 }
 0xbe1   :  { %2179 = vtanh.f32 %v1046_v5  ;;  %v1735_v14 = vmul.f32 -1.442695, %v1046_v5 }
 0xbe2   :  { %2181 = vpow2.f32 %v1732_v11 }
 0xbe3   :  { %2183 = vpow2.f32 %v1735_v14 }
 0xbe7   :  { %v2178_v7 = vpop.eup %2177 }
 0xbe8   :  { %952 = vrot.lane.b32.xlu0 %v2178_v7, %s2245_s11 }
 0xbeb   :  { %v2180_v10 = vpop.eup %2179 }
 0xbec   :  { %1056 = vrot.lane.b32.xlu1 %v2180_v10, %s2245_s11  ;;  %v2182_v15 = vpop.eup %2181 }
 0xbed   :  { %v946_v16 = vadd.f32 1.0, %v2182_v15  ;;  %v2184_v17 = vpop.eup %2183 }
 0xbee   :  { %v1050_v18 = vadd.f32 1.0, %v2184_v17 }
 0xbef   :  { %2185 = vrcp.f32 %v946_v16 }
 0xbf0   :  { %2187 = vrcp.f32 %v1050_v18 }
 0xbf9   :  { %v2186_v19 = vpop.eup %2185 }
 0xbfa   :  { %v2188_v22 = vpop.eup %2187  ;;  %v950_v26 = vmul.f32 %v2186_v19, %v2587_v25 }
 0xbfb   :  { %v1054_v30 = vmul.f32 %v2188_v22, %v2596_v29 }
 0xc5a   :  { %v953_v20 = vpop.permute.xlu0 %952 }
 0xc5b   :  { %v955_v21 = vmul.f32 %v2186_v19, %v953_v20 }
 0xc5d   :  { %957 = vrot.lane.b32.xlu0 %v955_v21, %s2245_s11 }
 0xc5e   :  { %v1057_v23 = vpop.permute.xlu1 %1056 }
 0xc5f   :  { %v1059_v24 = vmul.f32 %v2188_v22, %v1057_v23 }
 0xc61   :  { %1061 = vrot.lane.b32.xlu1 %v1059_v24, %s2245_s11 }
 0xccf   :  { %v958_v27 = vpop.permute.xlu0 %957 }
 0xcd0   :  { %v2590_v28 = vadd.f32 %v958_v27, %v950_v26 }
 0xcd2   :  { %2189 = vtanh.f32 %v2590_v28  ;;  %v2647_v3 = vsel %vm762_vm9, %v2590_v28, %v2587_v25 }
 0xcd3   :  { %v1062_v31 = vpop.permute.xlu1 %1061 }
 0xcd4   :  { %v2600_v32 = vadd.f32 %v1062_v31, %v1054_v30 }
 0xcd6   :  { %2191 = vtanh.f32 %v2600_v32  ;;  %v2656_v10 = vsel %vm657_vm8, %v2600_v32, %v2596_v29 }
 0xcdc   :  { %v2190_v33 = vpop.eup %2189 }
 0xcdd   :  { %963 = vrot.lane.b32.xlu0 %v2190_v33, %s2245_s11 }
 0xce0   :  { %v2192_v34 = vpop.eup %2191 }
 0xce1   :  { %1067 = vrot.lane.b32.xlu1 %v2192_v34, %s2245_s11 }
 0xd4f   :  { %v964_v35 = vpop.permute.xlu0 %963 }
 0xd50   :  { %v966_v36 = vmul.f32 %v2186_v19, %v964_v35 }
 0xd52   :  { %v2608_v37 = vsel %vm762_vm9, %v966_v36, %v2547_v55 }
 0xd53   :  { %1076 = vrot.lane.b32.xlu0 %v2608_v37, %s2246_s2  ;;  %v1068_v38 = vpop.permute.xlu1 %1067 }
 0xd54   :  { %v1070_v39 = vmul.f32 %v2188_v22, %v1068_v38 }
 0xd56   :  { %v2615_v40 = vsel %vm657_vm8, %v1070_v39, %v2555_v58 }
 0xd57   :  { %1180 = vrot.lane.b32.xlu1 %v2615_v40, %s2246_s2 }
 0xdc5   :  { %v1077_v41 = vpop.permute.xlu0 %1076 }
 0xdc6   :  { %1952 = vmatmul.mubr.msk.f32.vlgmr.msra.gmra.mrb[10].mxu0 %vm34_vm3, %v1077_v41 }
 0xdc7   :  { %2083 = vmatpush3.bf16.msra.mxu0 %v2289_v4  ;;  %1973 = vmatprep.mubr.msk.f32.mxu0 %vm2242_vm0, %v2243_v8 }
 0xdc8   :  { %2084 = vmatprep.subr.bf16.mxu0 %v2241_v0 }
 0xdc9   :  { %v1181_v42 = vpop.permute.xlu1 %1180 }
 0xdca   :  { %1963 = vmatmul.mubr.msk.f32.vlgmr.msra.gmra.mrb[10].mxu1 %vm34_vm3, %v1181_v42 }
 0xdcb   :  { %2086 = vmatpush3.bf16.msra.mxu0 %v2313_v12  ;;  %2089 = vmatpush3.bf16.msra.mxu1 %v2304_v9 }
 0xdcc   :  { %2090 = vmatprep.subr.bf16.mxu1 %v2241_v0  ;;  %1984 = vmatprep.mubr.msk.f32.mxu1 %vm2242_vm0, %v2243_v8 }
 0xdcd   :  { %2093 = vmatprep.subr.bf16.mxu0 %v2241_v0 }
 0xdcf   :  { %2092 = vmatpush3.bf16.msra.mxu1 %v2317_v13 }
 0xdd0   :  { %2099 = vmatprep.subr.bf16.mxu1 %v2241_v0 }
 0xe99   :  { %v1146_v44 = vpop.f32.mrb[10].mxu0 }
 0xe9a   :  { %v1150_v45 = vadd.f32 %v1736_v43, %v1146_v44  ;;  %v1953_v47 = vpop.f32.mrb[11].mxu0 }
 0xe9c   :  { %2193 = vtanh.f32 %v1150_v45  ;;  %v1738_v54 = vmul.f32 -1.442695, %v1150_v45 }
 0xe9d   :  { %v1250_v49 = vpop.f32.mrb[10].mxu1 }
 0xe9e   :  { %v1254_v50 = vadd.f32 %v1739_v48, %v1250_v49  ;;  %v1964_v51 = vpop.f32.mrb[11].mxu1 }
 0xea0   :  { %2195 = vtanh.f32 %v1254_v50  ;;  %v1741_v55 = vmul.f32 -1.442695, %v1254_v50 }
 0xea1   :  { %2197 = vpow2.f32 %v1738_v54 }
 0xea2   :  { %2199 = vpow2.f32 %v1741_v55 }
 0xea6   :  { %v2194_v52 = vpop.eup %2193 }
 0xea7   :  { %1160 = vrot.lane.b32.xlu0 %v2194_v52, %s2245_s11 }
 0xeaa   :  { %v2196_v53 = vpop.eup %2195 }
 0xeab   :  { %1264 = vrot.lane.b32.xlu1 %v2196_v53, %s2245_s11  ;;  %v2198_v56 = vpop.eup %2197 }
 0xeac   :  { %v1154_v57 = vadd.f32 1.0, %v2198_v56  ;;  %v2200_v58 = vpop.eup %2199 }
 0xead   :  { %v1258_v59 = vadd.f32 1.0, %v2200_v58 }
 0xeae   :  { %2201 = vrcp.f32 %v1154_v57 }
 0xeaf   :  { %2203 = vrcp.f32 %v1258_v59 }
 0xeb8   :  { %v2202_v60 = vpop.eup %2201 }
 0xeb9   :  { %v2204_v63 = vpop.eup %2203  ;;  %v1158_v5 = vmul.f32 %v2202_v60, %v2647_v3 }
 0xeba   :  { %v1262_v11 = vmul.f32 %v2204_v63, %v2656_v10 }
 0xf19   :  { %v1161_v61 = vpop.permute.xlu0 %1160 }
 0xf1a   :  { %v1163_v62 = vmul.f32 %v2202_v60, %v1161_v61  ;;  %v1748_v61 = vld [vmem:[%s2748_s0 + $0x38] sm:$0xff] }
 0xf1c   :  { %1165 = vrot.lane.b32.xlu0 %v1163_v62, %s2245_s11 }
 0xf1d   :  { %v1265_v1 = vpop.permute.xlu1 %1264 }
 0xf1e   :  { %v1267_v2 = vmul.f32 %v2204_v63, %v1265_v1 }
 0xf20   :  { %1269 = vrot.lane.b32.xlu1 %v1267_v2, %s2245_s11  ;;  %v1592_v2 = vld [vmem:[%s2749_s1] sm:$0xff] }
 0xf8e   :  { %v1166_v6 = vpop.permute.xlu0 %1165 }
 0xf8f   :  { %v2650_v7 = vadd.f32 %v1166_v6, %v1158_v5 }
 0xf91   :  { %2205 = vtanh.f32 %v2650_v7  ;;  %v1176_v42 = vsel %vm552_vm7, %v2650_v7, %v2647_v3 }
 0xf92   :  { %v1270_v14 = vpop.permute.xlu1 %1269 }
 0xf93   :  { %v2660_v15 = vadd.f32 %v1270_v14, %v1262_v11 }
 0xf95   :  { %2207 = vtanh.f32 %v2660_v15  ;;  %v1280_v47 = vsel %vm447_vm6, %v2660_v15, %v2656_v10 }
 0xf9b   :  { %v2206_v16 = vpop.eup %2205 }
 0xf9c   :  { %1171 = vrot.lane.b32.xlu0 %v2206_v16, %s2245_s11 }
 0xf9f   :  { %v2208_v17 = vpop.eup %2207 }
 0xfa0   :  { %1275 = vrot.lane.b32.xlu1 %v2208_v17, %s2245_s11 }
0x100e   :  { %v1172_v18 = vpop.permute.xlu0 %1171 }
0x100f   :  { %v1174_v19 = vmul.f32 %v2202_v60, %v1172_v18 }
0x1011   :  { %v2668_v20 = vsel %vm552_vm7, %v1174_v19, %v2608_v37 }
0x1012   :  { %1284 = vrot.lane.b32.xlu0 %v2668_v20, %s2246_s2  ;;  %v1276_v21 = vpop.permute.xlu1 %1275 }
0x1013   :  { %v1278_v22 = vmul.f32 %v2204_v63, %v1276_v21 }
0x1015   :  { %v2675_v23 = vsel %vm447_vm6, %v1278_v22, %v2615_v40 }
0x1016   :  { %1388 = vrot.lane.b32.xlu1 %v2675_v23, %s2246_s2 }
0x1084   :  { %v1285_v24 = vpop.permute.xlu0 %1284 }
0x1085   :  { %1974 = vmatmul.mubr.msk.f32.vlgmr.msra.gmra.mrb[12].mxu0 %vm34_vm3, %v1285_v24 }
0x1086   :  { %2095 = vmatpush3.bf16.msra.mxu0 %v2289_v4  ;;  %1995 = vmatprep.mubr.msk.f32.mxu0 %vm2242_vm0, %v2243_v8  ;;  %v1742_v4 = vld [vmem:[%s2748_s0 + $0x30] sm:$0xff]  ;;  %s2247_s0 = smov 96  }
0x1087   :  { %2096 = vmatprep.subr.bf16.mxu0 %v2241_v0 }
0x1088   :  { %v1389_v25 = vpop.permute.xlu1 %1388 }
0x1089   :  { %1985 = vmatmul.mubr.msk.f32.vlgmr.msra.gmra.mrb[12].mxu1 %vm34_vm3, %v1389_v25 }
0x108a   :  { %2098 = vmatpush3.bf16.msra.mxu0 %v2313_v12  ;;  %2101 = vmatpush3.bf16.msra.mxu1 %v2304_v9  ;;  %v1745_v12 = vld [vmem:[%s2749_s1 + $0x8] sm:$0xff] }
0x108b   :  { %2102 = vmatprep.subr.bf16.mxu1 %v2241_v0  ;;  %2006 = vmatprep.mubr.msk.f32.mxu1 %vm2242_vm0, %v2243_v8 }
0x108e   :  { %2104 = vmatpush3.bf16.msra.mxu1 %v2317_v13 }
0x1158   :  { %v1354_v26 = vpop.f32.mrb[12].mxu0 }
0x1159   :  { %v1358_v27 = vadd.f32 %v1742_v4, %v1354_v26  ;;  %v1975_v28 = vpop.f32.mrb[13].mxu0 }
0x115b   :  { %2209 = vtanh.f32 %v1358_v27  ;;  %v1744_v13 = vmul.f32 -1.442695, %v1358_v27 }
0x115c   :  { %v1458_v9 = vpop.f32.mrb[12].mxu1 }
0x115d   :  { %v1462_v29 = vadd.f32 %v1745_v12, %v1458_v9  ;;  %v1986_v0 = vpop.f32.mrb[13].mxu1 }
0x115f   :  { %2211 = vtanh.f32 %v1462_v29  ;;  %v1747_v31 = vmul.f32 -1.442695, %v1462_v29 }
0x1160   :  { %2213 = vpow2.f32 %v1744_v13 }
0x1161   :  { %2215 = vpow2.f32 %v1747_v31 }
0x1165   :  { %v2210_v30 = vpop.eup %2209 }
0x1166   :  { %1368 = vrot.lane.b32.xlu0 %v2210_v30, %s2245_s11 }
0x1169   :  { %v2212_v8 = vpop.eup %2211 }
0x116a   :  { %1472 = vrot.lane.b32.xlu1 %v2212_v8, %s2245_s11  ;;  %v2214_v32 = vpop.eup %2213 }
0x116b   :  { %v1362_v33 = vadd.f32 1.0, %v2214_v32  ;;  %v2216_v34 = vpop.eup %2215 }
0x116c   :  { %v1466_v35 = vadd.f32 1.0, %v2216_v34 }
0x116d   :  { %2217 = vrcp.f32 %v1362_v33 }
0x116e   :  { %2219 = vrcp.f32 %v1466_v35 }
0x1177   :  { %v2218_v36 = vpop.eup %2217 }
0x1178   :  { %v2220_v39 = vpop.eup %2219  ;;  %v1366_v43 = vmul.f32 %v2218_v36, %v1176_v42 }
0x1179   :  { %v1470_v48 = vmul.f32 %v2220_v39, %v1280_v47 }
0x11d8   :  { %v1369_v37 = vpop.permute.xlu0 %1368 }
0x11d9   :  { %v1371_v38 = vmul.f32 %v2218_v36, %v1369_v37 }
0x11db   :  { %1373 = vrot.lane.b32.xlu0 %v1371_v38, %s2245_s11 }
0x11dc   :  { %v1473_v40 = vpop.permute.xlu1 %1472 }
0x11dd   :  { %v1475_v41 = vmul.f32 %v2220_v39, %v1473_v40 }
0x11df   :  { %1477 = vrot.lane.b32.xlu1 %v1475_v41, %s2245_s11 }
0x124d   :  { %v1374_v44 = vpop.permute.xlu0 %1373 }
0x124e   :  { %v1376_v45 = vadd.f32 %v1374_v44, %v1366_v43 }
0x1250   :  { %2221 = vtanh.f32 %v1376_v45  ;;  %v1384_v25 = vsel %vm342_vm5, %v1376_v45, %v1176_v42 }
0x1251   :  { %v1478_v49 = vpop.permute.xlu1 %1477 }
0x1252   :  { %v1480_v50 = vadd.f32 %v1478_v49, %v1470_v48 }
0x1254   :  { %2223 = vtanh.f32 %v1480_v50  ;;  %v1488_v28 = vsel %vm237_vm4, %v1480_v50, %v1280_v47 }
0x125a   :  { %v2222_v51 = vpop.eup %2221 }
0x125b   :  { %1379 = vrot.lane.b32.xlu0 %v2222_v51, %s2245_s11 }
0x125e   :  { %v2224_v52 = vpop.eup %2223 }
0x125f   :  { %1483 = vrot.lane.b32.xlu1 %v2224_v52, %s2245_s11 }
0x12cd   :  { %v1380_v53 = vpop.permute.xlu0 %1379 }
0x12ce   :  { %v1382_v54 = vmul.f32 %v2218_v36, %v1380_v53 }
0x12d0   :  { %v1383_v55 = vsel %vm342_vm5, %v1382_v54, %v2668_v20 }
0x12d1   :  { %1492 = vrot.lane.b32.xlu0 %v1383_v55, %s2246_s2  ;;  %v1484_v56 = vpop.permute.xlu1 %1483 }
0x12d2   :  { %v1486_v57 = vmul.f32 %v2220_v39, %v1484_v56 }
0x12d4   :  { %v1487_v58 = vsel %vm237_vm4, %v1486_v57, %v2675_v23 }
0x12d5   :  { %1594 = vrot.lane.b32.xlu1 %v1487_v58, %s2246_s2 }
0x1343   :  { %v1493_v59 = vpop.permute.xlu0 %1492 }
0x1344   :  { %1996 = vmatmul.mubr.msk.f32.vlgmr.msra.gmra.mrb[14].mxu0 %vm34_vm3, %v1493_v59 }
0x1347   :  { %v1595_v60 = vpop.permute.xlu1 %1594 }
0x1348   :  { %2007 = vmatmul.mubr.msk.f32.vlgmr.msra.gmra.mrb[14].mxu1 %vm34_vm3, %v1595_v60 }
0x1417   :  { %v1562_v62 = vpop.f32.mrb[14].mxu0 }
0x1418   :  { %v1566_v63 = vadd.f32 %v1748_v61, %v1562_v62  ;;  %v1997_v1 = vpop.f32.mrb[15].mxu0 }
0x141a   :  { %2225 = vtanh.f32 %v1566_v63  ;;  %v1750_v11 = vmul.f32 -1.442695, %v1566_v63 }
0x141b   :  { %v1664_v3 = vpop.f32.mrb[14].mxu1 }
0x141c   :  { %v1668_v5 = vadd.f32 %v1664_v3, %v1592_v2  ;;  %v2008_v6 = vpop.f32.mrb[15].mxu1 }
0x141e   :  { %2227 = vtanh.f32 %v1668_v5  ;;  %v1752_v14 = vmul.f32 -1.442695, %v1668_v5 }
0x141f   :  { %2229 = vpow2.f32 %v1750_v11 }
0x1420   :  { %2231 = vpow2.f32 %v1752_v14 }
0x1424   :  { %v2226_v7 = vpop.eup %2225 }
0x1425   :  { %1576 = vrot.lane.b32.xlu0 %v2226_v7, %s2245_s11 }
0x1428   :  { %v2228_v10 = vpop.eup %2227 }
0x1429   :  { %1678 = vrot.lane.b32.xlu1 %v2228_v10, %s2245_s11  ;;  %v2230_v15 = vpop.eup %2229 }
0x142a   :  { %v1570_v16 = vadd.f32 1.0, %v2230_v15  ;;  %v2232_v17 = vpop.eup %2231 }
0x142b   :  { %v1672_v18 = vadd.f32 1.0, %v2232_v17 }
0x142c   :  { %2233 = vrcp.f32 %v1570_v16 }
0x142d   :  { %2235 = vrcp.f32 %v1672_v18 }
0x1436   :  { %v2234_v19 = vpop.eup %2233 }
0x1437   :  { %v2236_v22 = vpop.eup %2235  ;;  %v1574_v4 = vmul.f32 %v2234_v19, %v1384_v25 }
0x1438   :  { %v1676_v12 = vmul.f32 %v2236_v22, %v1488_v28 }
0x1497   :  { %v1577_v20 = vpop.permute.xlu0 %1576 }
0x1498   :  { %v1579_v21 = vmul.f32 %v2234_v19, %v1577_v20 }
0x149a   :  { %1581 = vrot.lane.b32.xlu0 %v1579_v21, %s2245_s11 }
0x149b   :  { %v1679_v23 = vpop.permute.xlu1 %1678 }
0x149c   :  { %v1681_v24 = vmul.f32 %v2236_v22, %v1679_v23 }
0x149e   :  { %1683 = vrot.lane.b32.xlu1 %v1681_v24, %s2245_s11 }
0x150c   :  { %v1582_v26 = vpop.permute.xlu0 %1581 }
0x150d   :  { %v1584_v27 = vadd.f32 %v1582_v26, %v1574_v4 }
0x150f   :  { %2237 = vtanh.f32 %v1584_v27 }
0x1510   :  { %v1684_v9 = vpop.permute.xlu1 %1683 }
0x1511   :  { %v1686_v29 = vadd.f32 %v1684_v9, %v1676_v12 }
0x1513   :  { %2239 = vtanh.f32 %v1686_v29 }
0x1519   :  { %v2238_v0 = vpop.eup %2237 }
0x151a   :  { %1587 = vrot.lane.b32.xlu0 %v2238_v0, %s2245_s11 }
0x151d   :  { %v2240_v30 = vpop.eup %2239 }
0x151e   :  { %1689 = vrot.lane.b32.xlu1 %v2240_v30, %s2245_s11 }
0x158c   :  { %v1588_v8 = vpop.permute.xlu0 %1587 }
0x158d   :  { %v1590_v13 = vmul.f32 %v2234_v19, %v1588_v8 }
0x158f   :  { %v1591_v31 = vsel %vm137_vm2, %v1590_v13, %v1383_v55 }
0x1590   :  { %1695 = vrot.lane.b32.xlu0 %v1591_v31, %s2246_s2  ;;  %v1690_v32 = vpop.permute.xlu1 %1689 }
0x1591   :  { %v1692_v33 = vmul.f32 %v2236_v22, %v1690_v32 }
0x1593   :  { %v1693_v34 = vsel %vm33_vm1, %v1692_v33, %v1487_v58 }
0x1594   :  { %1699 = vrot.lane.b32.xlu1 %v1693_v34, %s2247_s0 }
0x1602   :  { %v1696_v35 = vpop.permute.xlu0 %1695 }
0x1606   :  { %v1700_v36 = vpop.permute.xlu1 %1699 }
0x1607   :  { %v1702_v37 = vsel %vm34_vm3, %v1696_v35, %v1700_v36 }
0x1608   :  { %1704 = vst.msk [vmem:[%s2751_s5] sm:$0xff] %vm1703_vm10, %v1702_v37 }

</bundles_post_ra>
